<compile_context>
chip_gen: v7x
topology: tpu7x:2x2x1
jax: 0.10.0
libtpu: 0.0.40
codegen_flags: <defaults>
</compile_context>

<pallas_src>
import functools

import jax
import jax.numpy as jnp
import numpy as np
from jax import lax
from jax.experimental import pallas as pl
from jax.experimental.pallas import tpu as pltpu


# ----------------------------------------------------------------------------
# Pallas kernel
# ----------------------------------------------------------------------------
def _make_encoder_kernel(num_layers, T, B, H, compute_dtype):
    """Builds the wavefront LSTM-encoder kernel (static shapes closed over)."""
    L = num_layers
    G = 4 * H
    cdt = compute_dtype

    def kernel(x_ref, w_ih0_ref, b0_ref, w_pk_ref, b_pk_ref,
               fc_w_ref, fc_b_ref, out_ref):
        # Hoisted: layer-0 input-to-hidden gates for the whole sequence in one
        # MXU matmul (off the serial chain), layer-0 bias folded in once.
        pre0 = (
            jnp.dot(x_ref[...], w_ih0_ref[...],
                    preferred_element_type=jnp.float32)
            + b0_ref[...]
        )                                            # (T*B, 4H), rows t-major

        # Resident packed weights + hoisted bias broadcast (broadcast_in_dim is
        # not CSE'd, so do it once outside the unrolled recurrence).
        w_pk = w_pk_ref[...]                         # (L*H, L*4H) block-diag
        b_pk = jnp.broadcast_to(b_pk_ref[...], (B, L * G))   # layer-0 block = 0

        def cell(gates, c_prev, first):
            # gates: (B, 4H); i/f/o columns were pre-scaled by 0.5 so that the
            # single tanh realises sigmoid(x) = 0.5*tanh(x/2) + 0.5.
            th = jnp.tanh(gates)                     # one full-width EUP op
            i = 0.5 * th[:, 0 * H:1 * H] + 0.5
            f = 0.5 * th[:, 1 * H:2 * H] + 0.5
            g = th[:, 2 * H:3 * H]
            o = 0.5 * th[:, 3 * H:4 * H] + 0.5
            c_new = i * g if first else f * c_prev + i * g
            h_new = o * jnp.tanh(c_new)
            return h_new, c_new

        h = [jnp.zeros((B, H), jnp.float32) for _ in range(L)]
        c = [jnp.zeros((B, H), jnp.float32) for _ in range(L)]

        # Wavefront step 0: only layer 0 is active and h0 = c0 = 0, so the
        # recurrent matmul is skipped entirely (peeled step).
        h[0], c[0] = cell(pre0[0:B, :], c[0], first=True)

        # Wavefront steps 1 .. T+L-2: one packed block-diagonal matmul each.
        for s in range(1, T + L - 1):
            lhs = h[0] if L == 1 else jnp.concatenate(h, axis=1)   # (B, L*H)
            hh = (
                jnp.dot(lhs.astype(cdt), w_pk,
                        preferred_element_type=jnp.float32)
                + b_pk
            )                                        # (B, L*4H)
            new_h, new_c = list(h), list(c)
            for l in range(L):
                t = s - l
                if not 0 <= t < T:
                    continue                         # layer inactive this step
                gates = hh[:, l * G:(l + 1) * G]
                if l == 0:                           # add hoisted input gates
                    gates = gates + pre0[t * B:(t + 1) * B, :]
                new_h[l], new_c[l] = cell(gates, c[l], first=(t == 0))
            h, c = new_h, new_c

        # Fused fc_mu / fc_logvar head on the top layer's final hidden state
        # (output[:, -1] == h[-1] for a unidirectional LSTM); lane-dense OUT.
        out_ref[...] = (
            jnp.dot(h[L - 1].astype(cdt), fc_w_ref[...],
                    preferred_element_type=jnp.float32)
            + fc_b_ref[...]
        )

    return kernel


# ----------------------------------------------------------------------------
# Wrapper-side weight packing
# ----------------------------------------------------------------------------
def _gate_scale(H):
    # sigmoid-via-tanh: scale i / f / o gate columns by 0.5, leave g at 1.
    return jnp.concatenate([
        jnp.full((H,), 0.5, jnp.float32),
        jnp.full((H,), 0.5, jnp.float32),
        jnp.ones((H,), jnp.float32),
        jnp.full((H,), 0.5, jnp.float32),
    ])


def _pack_params(params, num_layers, compute_dtype):
    """Packs LSTM weights for the wavefront block-diagonal schedule."""
    L = num_layers
    H = params["w_hhT"][0].shape[0]
    G = 4 * H
    sc = _gate_scale(H)                              # (4H,)

    # Layer-0 input projection (kept f32: it is off the critical path).
    w_ih0 = (params["w_ihT"][0] * sc).astype(jnp.float32)        # (D, 4H)
    b0 = (params["bias"][0] * sc).astype(jnp.float32)            # (1, 4H)

    # Block weight matrix for the per-step packed matmul:
    #   rows [l*H:(l+1)*H] carry h_l, cols [l*G:(l+1)*G] are layer-l gates.
    #   W[l,   l] = W_hh_l            (all l)
    #   W[l-1, l] = W_ih_l            (l >= 1)
    w_pk = jnp.zeros((L * H, L * G), jnp.float32)
    b_pk = jnp.zeros((1, L * G), jnp.float32)        # layer-0 bias lives in pre0
    for l in range(L):
        w_pk = w_pk.at[l * H:(l + 1) * H, l * G:(l + 1) * G].set(
            params["w_hhT"][l] * sc)
        if l >= 1:
            w_pk = w_pk.at[(l - 1) * H:l * H, l * G:(l + 1) * G].set(
                params["w_ihT"][l] * sc)
            b_pk = b_pk.at[:, l * G:(l + 1) * G].set(params["bias"][l] * sc)

    return w_ih0, b0, w_pk.astype(compute_dtype), b_pk


def _pack_head(params, compute_dtype):
    """Fuses fc_mu / fc_logvar into one lane-dense head padded to 128 lanes."""
    H, Z = params["mu_wT"].shape
    OUT = max(128, ((2 * Z + 127) // 128) * 128)
    assert 2 * Z <= OUT, f"fused mu/logvar head needs 2*Z <= OUT={OUT}, got Z={Z}"
    fc_w = jnp.concatenate(
        [params["mu_wT"], params["lv_wT"],
         jnp.zeros((H, OUT - 2 * Z), jnp.float32)], axis=1)       # (H, OUT)
    fc_b = jnp.concatenate(
        [params["mu_b"], params["lv_b"],
         jnp.zeros((1, OUT - 2 * Z), jnp.float32)], axis=1)       # (1, OUT)
    return fc_w.astype(compute_dtype), fc_b, Z, OUT


def vae_encoder_forward(x, params, ts_len, num_layers, use_bf16=True):
    """x: (B, T, D) float32 (batch_first, like the PyTorch module)."""
    B, T, D = x.shape
    H = params["w_hhT"][0].shape[0]
    cdt = jnp.bfloat16 if use_bf16 else jnp.float32

    y = x[:, :ts_len]                                # glue: pure slice in JAX

    # Time-major (T*B, D) layout feeds the hoisted layer-0 input projection
    # directly (no in-kernel concatenate / relayout of per-step blocks).
    x_tm = jnp.transpose(x, (1, 0, 2)).reshape(T * B, D)

    w_ih0, b0, w_pk, b_pk = _pack_params(params, num_layers, cdt)
    fc_w, fc_b, Z, OUT = _pack_head(params, cdt)

    kernel = _make_encoder_kernel(num_layers, T, B, H, cdt)
    vmem = pl.BlockSpec(memory_space=pltpu.MemorySpace.VMEM)

    # Single invocation, everything VMEM-resident (<100 KB): no grid, no
    # pipelining (per-step grid overhead would dominate at these sizes).
    # TODO(synk): if B grows, add a leading batch grid axis with
    #             dimension_semantics=("parallel",) so v7x's two TensorCores
    #             split the batch; the packed weights fit either core's VMEM.
    # TODO(synk): on v7x the packed RHS could be held weight-stationary across
    #             steps via pltpu.matmul_push_rhs / matmul_acc_lhs (MRB); kept
    #             on the portable jnp.dot path here.
    out = pl.pallas_call(
        kernel,
        out_shape=jax.ShapeDtypeStruct((B, OUT), jnp.float32),
        in_specs=[vmem] * 7,
        out_specs=vmem,
    )(x_tm, w_ih0, b0, w_pk, b_pk, fc_w, fc_b)

    mu = out[:, :Z]
    logvar = out[:, Z:2 * Z]
    return mu, logvar, y


# ----------------------------------------------------------------------------
# Pure-JAX reference (same math, via lax.scan) for a correctness check
# ----------------------------------------------------------------------------
def vae_encoder_reference(x, params, ts_len, num_layers):
    B, T, D = x.shape
    H = params["w_hhT"][0].shape[0]
    y = x[:, :ts_len]

    def cell(l, inp, h, c):
        gates = (
            jnp.dot(inp, params["w_ihT"][l], precision=lax.Precision.HIGHEST)
            + jnp.dot(h, params["w_hhT"][l], precision=lax.Precision.HIGHEST)
            + params["bias"][l]
        )
        i = jax.nn.sigmoid(gates[:, 0 * H:1 * H])
        f = jax.nn.sigmoid(gates[:, 1 * H:2 * H])
        g = jnp.tanh(gates[:, 2 * H:3 * H])
        o = jax.nn.sigmoid(gates[:, 3 * H:4 * H])
        c_new = f * c + i * g
        h_new = o * jnp.tanh(c_new)
        return h_new, c_new

    def step(carry, x_t):
        h_all, c_all = carry
        inp = x_t
        for l in range(num_layers):
            h_new, c_new = cell(l, inp, h_all[l], c_all[l])
            h_all = h_all.at[l].set(h_new)
            c_all = c_all.at[l].set(c_new)
            inp = h_new
        return (h_all, c_all), None

    h0 = jnp.zeros((num_layers, B, H), jnp.float32)
    c0 = jnp.zeros((num_layers, B, H), jnp.float32)
    (h_all, _), _ = lax.scan(step, (h0, c0), jnp.transpose(x, (1, 0, 2)))
    h_top = h_all[num_layers - 1]
    mu = jnp.dot(h_top, params["mu_wT"], precision=lax.Precision.HIGHEST) + params["mu_b"]
    lv = jnp.dot(h_top, params["lv_wT"], precision=lax.Precision.HIGHEST) + params["lv_b"]
    return mu, lv, y


# ----------------------------------------------------------------------------
# Deterministic parameter init (shapes follow nn.LSTM / nn.Linear)
# ----------------------------------------------------------------------------
def init_params(key, layer_sizes, num_layers):
    D = layer_sizes[0]
    H = layer_sizes[-2]
    Z = layer_sizes[-1]
    scale = 1.0 / np.sqrt(H)

    w_ihT, w_hhT, bias = [], [], []
    for l in range(num_layers):
        in_l = D if l == 0 else H
        key, k1, k2, k3, k4 = jax.random.split(key, 5)
        w_ih = jax.random.uniform(k1, (4 * H, in_l), jnp.float32, -scale, scale)
        w_hh = jax.random.uniform(k2, (4 * H, H), jnp.float32, -scale, scale)
        b_ih = jax.random.uniform(k3, (4 * H,), jnp.float32, -scale, scale)
        b_hh = jax.random.uniform(k4, (4 * H,), jnp.float32, -scale, scale)
        w_ihT.append(jnp.transpose(w_ih))                       # (in_l, 4H)
        w_hhT.append(jnp.transpose(w_hh))                       # (H, 4H)
        bias.append((b_ih + b_hh).reshape(1, 4 * H))            # combined bias

    key, k1, k2, k3, k4 = jax.random.split(key, 5)
    s2 = 1.0 / np.sqrt(H)
    mu_w = jax.random.uniform(k1, (Z, H), jnp.float32, -s2, s2)
    mu_b = jax.random.uniform(k2, (Z,), jnp.float32, -s2, s2)
    lv_w = jax.random.uniform(k3, (Z, H), jnp.float32, -s2, s2)
    lv_b = jax.random.uniform(k4, (Z,), jnp.float32, -s2, s2)

    return {
        "w_ihT": w_ihT,
        "w_hhT": w_hhT,
        "bias": bias,
        "mu_wT": jnp.transpose(mu_w),
        "mu_b": mu_b.reshape(1, Z),
        "lv_wT": jnp.transpose(lv_w),
        "lv_b": lv_b.reshape(1, Z),
    }


if __name__ == "__main__":
    # Small shapes consistent with the module's forward.
    layer_sizes = [4, 32, 8]      # [input_size, hidden_size, latent_size]
    num_layers = 2
    ts_len = 4
    B, T, D = 2, 8, layer_sizes[0]

    key = jax.random.PRNGKey(0)
    kx, kp = jax.random.split(key)
    x = jax.random.normal(kx, (B, T, D), jnp.float32)
    params = init_params(kp, layer_sizes, num_layers)

    mu_ref, lv_ref, y_ref = vae_encoder_reference(x, params, ts_len, num_layers)

    # 1) f32 MXU-operand path: tight correctness check.
    fwd_f32 = jax.jit(functools.partial(
        vae_encoder_forward, ts_len=ts_len, num_layers=num_layers, use_bf16=False))
    mu, logvar, y = fwd_f32(x, params)
    jax.block_until_ready((mu, logvar, y))
    np.testing.assert_allclose(np.asarray(mu), np.asarray(mu_ref), rtol=1e-3, atol=1e-3)
    np.testing.assert_allclose(np.asarray(logvar), np.asarray(lv_ref), rtol=1e-3, atol=1e-3)
    np.testing.assert_allclose(np.asarray(y), np.asarray(y_ref), rtol=0, atol=0)

    # 2) bf16 MXU-operand path (single-pass MXU on the recurrence). bf16
    #    operands carry ~1e-3 relative rounding per matmul, which compounds
    #    over T steps, so the tolerance is widened accordingly.
    fwd_bf16 = jax.jit(functools.partial(
        vae_encoder_forward, ts_len=ts_len, num_layers=num_layers, use_bf16=True))
    mu_b, logvar_b, y_b = fwd_bf16(x, params)
    jax.block_until_ready((mu_b, logvar_b, y_b))
    np.testing.assert_allclose(np.asarray(mu_b), np.asarray(mu_ref), rtol=2e-2, atol=2e-2)
    np.testing.assert_allclose(np.asarray(logvar_b), np.asarray(lv_ref), rtol=2e-2, atol=2e-2)
    np.testing.assert_allclose(np.asarray(y_b), np.asarray(y_ref), rtol=0, atol=0)

    print("KERNEL_OK")
</pallas_src>

<mosaic_0001>
module attributes {stable_mosaic.version = 11 : i64} {
  func.func @kernel(%arg0: memref<16x4xf32, #tpu.memory_space<vmem>>, %arg1: memref<4x128xf32, #tpu.memory_space<vmem>>, %arg2: memref<1x128xf32, #tpu.memory_space<vmem>>, %arg3: memref<64x256xf32, #tpu.memory_space<vmem>>, %arg4: memref<1x256xf32, #tpu.memory_space<vmem>>, %arg5: memref<32x128xf32, #tpu.memory_space<vmem>>, %arg6: memref<1x128xf32, #tpu.memory_space<vmem>>, %arg7: memref<2x128xf32, #tpu.memory_space<vmem>>) attributes {dimension_semantics = [], scalar_prefetch = 0 : i64, scratch_operands = 0 : i64, tpu.core_type = #tpu.core_type<tc>} {
    %c0 = arith.constant 0 : index
    %c0_0 = arith.constant 0 : index
    %0 = vector.load %arg0[%c0, %c0_0] : memref<16x4xf32, #tpu.memory_space<vmem>>, vector<16x4xf32>
    %c0_1 = arith.constant 0 : index
    %c0_2 = arith.constant 0 : index
    %1 = vector.load %arg1[%c0_1, %c0_2] : memref<4x128xf32, #tpu.memory_space<vmem>>, vector<4x128xf32>
    %cst = arith.constant dense<0.000000e+00> : vector<16x128xf32>
    %2 = tpu.matmul %0, %1, %cst {dimension_numbers = #tpu.dot_dimension_numbers<[1], [0], [0], [1], [0, 0, 1, 1], [], []>} : vector<16x4xf32>, vector<4x128xf32>, vector<16x128xf32> -> vector<16x128xf32>
    %c0_3 = arith.constant 0 : index
    %c0_4 = arith.constant 0 : index
    %3 = vector.load %arg2[%c0_3, %c0_4] : memref<1x128xf32, #tpu.memory_space<vmem>>, vector<1x128xf32>
    %4 = vector.broadcast %3 : vector<1x128xf32> to vector<16x128xf32>
    %5 = arith.addf %2, %4 : vector<16x128xf32>
    %c0_5 = arith.constant 0 : index
    %c0_6 = arith.constant 0 : index
    %6 = vector.load %arg3[%c0_5, %c0_6] : memref<64x256xf32, #tpu.memory_space<vmem>>, vector<64x256xf32>
    %c0_7 = arith.constant 0 : index
    %c0_8 = arith.constant 0 : index
    %7 = vector.load %arg4[%c0_7, %c0_8] : memref<1x256xf32, #tpu.memory_space<vmem>>, vector<1x256xf32>
    %8 = vector.shape_cast %7 : vector<1x256xf32> to vector<1x256xf32>
    %9 = vector.broadcast %8 : vector<1x256xf32> to vector<2x256xf32>
    %cst_9 = arith.constant 0.000000e+00 : f32
    %10 = vector.broadcast %cst_9 : f32 to vector<2x32xf32>
    %11 = vector.extract_strided_slice %5 {offsets = [0, 0], sizes = [2, 128], strides = [1, 1]} : vector<16x128xf32> to vector<2x128xf32>
    %12 = math.tanh %11 : vector<2x128xf32>
    %13 = vector.extract_strided_slice %12 {offsets = [0, 0], sizes = [2, 32], strides = [1, 1]} : vector<2x128xf32> to vector<2x32xf32>
    %cst_10 = arith.constant 5.000000e-01 : f32
    %14 = vector.broadcast %cst_10 : f32 to vector<2x32xf32>
    %15 = arith.mulf %14, %13 : vector<2x32xf32>
    %cst_11 = arith.constant 5.000000e-01 : f32
    %16 = vector.broadcast %cst_11 : f32 to vector<2x32xf32>
    %17 = arith.addf %15, %16 : vector<2x32xf32>
    %18 = vector.extract_strided_slice %12 {offsets = [0, 64], sizes = [2, 32], strides = [1, 1]} : vector<2x128xf32> to vector<2x32xf32>
    %19 = vector.extract_strided_slice %12 {offsets = [0, 96], sizes = [2, 32], strides = [1, 1]} : vector<2x128xf32> to vector<2x32xf32>
    %cst_12 = arith.constant 5.000000e-01 : f32
    %20 = vector.broadcast %cst_12 : f32 to vector<2x32xf32>
    %21 = arith.mulf %20, %19 : vector<2x32xf32>
    %cst_13 = arith.constant 5.000000e-01 : f32
    %22 = vector.broadcast %cst_13 : f32 to vector<2x32xf32>
    %23 = arith.addf %21, %22 : vector<2x32xf32>
    %24 = arith.mulf %17, %18 : vector<2x32xf32>
    %25 = math.tanh %24 : vector<2x32xf32>
    %26 = arith.mulf %23, %25 : vector<2x32xf32>
    %27 = tpu.concatenate %26, %10 in 1 : vector<2x32xf32>, vector<2x32xf32> -> vector<2x64xf32>
    %cst_14 = arith.constant dense<0.000000e+00> : vector<2x256xf32>
    %28 = tpu.matmul %27, %6, %cst_14 {dimension_numbers = #tpu.dot_dimension_numbers<[1], [0], [0], [1], [0, 0, 1, 1], [], []>} : vector<2x64xf32>, vector<64x256xf32>, vector<2x256xf32> -> vector<2x256xf32>
    %29 = arith.addf %28, %9 : vector<2x256xf32>
    %30 = vector.extract_strided_slice %29 {offsets = [0, 0], sizes = [2, 128], strides = [1, 1]} : vector<2x256xf32> to vector<2x128xf32>
    %31 = vector.extract_strided_slice %5 {offsets = [2, 0], sizes = [2, 128], strides = [1, 1]} : vector<16x128xf32> to vector<2x128xf32>
    %32 = arith.addf %30, %31 : vector<2x128xf32>
    %33 = math.tanh %32 : vector<2x128xf32>
    %34 = vector.extract_strided_slice %33 {offsets = [0, 0], sizes = [2, 32], strides = [1, 1]} : vector<2x128xf32> to vector<2x32xf32>
    %cst_15 = arith.constant 5.000000e-01 : f32
    %35 = vector.broadcast %cst_15 : f32 to vector<2x32xf32>
    %36 = arith.mulf %35, %34 : vector<2x32xf32>
    %cst_16 = arith.constant 5.000000e-01 : f32
    %37 = vector.broadcast %cst_16 : f32 to vector<2x32xf32>
    %38 = arith.addf %36, %37 : vector<2x32xf32>
    %39 = vector.extract_strided_slice %33 {offsets = [0, 32], sizes = [2, 32], strides = [1, 1]} : vector<2x128xf32> to vector<2x32xf32>
    %cst_17 = arith.constant 5.000000e-01 : f32
    %40 = vector.broadcast %cst_17 : f32 to vector<2x32xf32>
    %41 = arith.mulf %40, %39 : vector<2x32xf32>
    %cst_18 = arith.constant 5.000000e-01 : f32
    %42 = vector.broadcast %cst_18 : f32 to vector<2x32xf32>
    %43 = arith.addf %41, %42 : vector<2x32xf32>
    %44 = vector.extract_strided_slice %33 {offsets = [0, 64], sizes = [2, 32], strides = [1, 1]} : vector<2x128xf32> to vector<2x32xf32>
    %45 = vector.extract_strided_slice %33 {offsets = [0, 96], sizes = [2, 32], strides = [1, 1]} : vector<2x128xf32> to vector<2x32xf32>
    %cst_19 = arith.constant 5.000000e-01 : f32
    %46 = vector.broadcast %cst_19 : f32 to vector<2x32xf32>
    %47 = arith.mulf %46, %45 : vector<2x32xf32>
    %cst_20 = arith.constant 5.000000e-01 : f32
    %48 = vector.broadcast %cst_20 : f32 to vector<2x32xf32>
    %49 = arith.addf %47, %48 : vector<2x32xf32>
    %50 = arith.mulf %43, %24 : vector<2x32xf32>
    %51 = arith.mulf %38, %44 : vector<2x32xf32>
    %52 = arith.addf %50, %51 : vector<2x32xf32>
    %53 = math.tanh %52 : vector<2x32xf32>
    %54 = arith.mulf %49, %53 : vector<2x32xf32>
    %55 = vector.extract_strided_slice %29 {offsets = [0, 128], sizes = [2, 128], strides = [1, 1]} : vector<2x256xf32> to vector<2x128xf32>
    %56 = math.tanh %55 : vector<2x128xf32>
    %57 = vector.extract_strided_slice %56 {offsets = [0, 0], sizes = [2, 32], strides = [1, 1]} : vector<2x128xf32> to vector<2x32xf32>
    %cst_21 = arith.constant 5.000000e-01 : f32
    %58 = vector.broadcast %cst_21 : f32 to vector<2x32xf32>
    %59 = arith.mulf %58, %57 : vector<2x32xf32>
    %cst_22 = arith.constant 5.000000e-01 : f32
    %60 = vector.broadcast %cst_22 : f32 to vector<2x32xf32>
    %61 = arith.addf %59, %60 : vector<2x32xf32>
    %62 = vector.extract_strided_slice %56 {offsets = [0, 64], sizes = [2, 32], strides = [1, 1]} : vector<2x128xf32> to vector<2x32xf32>
    %63 = vector.extract_strided_slice %56 {offsets = [0, 96], sizes = [2, 32], strides = [1, 1]} : vector<2x128xf32> to vector<2x32xf32>
    %cst_23 = arith.constant 5.000000e-01 : f32
    %64 = vector.broadcast %cst_23 : f32 to vector<2x32xf32>
    %65 = arith.mulf %64, %63 : vector<2x32xf32>
    %cst_24 = arith.constant 5.000000e-01 : f32
    %66 = vector.broadcast %cst_24 : f32 to vector<2x32xf32>
    %67 = arith.addf %65, %66 : vector<2x32xf32>
    %68 = arith.mulf %61, %62 : vector<2x32xf32>
    %69 = math.tanh %68 : vector<2x32xf32>
    %70 = arith.mulf %67, %69 : vector<2x32xf32>
    %71 = tpu.concatenate %54, %70 in 1 : vector<2x32xf32>, vector<2x32xf32> -> vector<2x64xf32>
    %cst_25 = arith.constant dense<0.000000e+00> : vector<2x256xf32>
    %72 = tpu.matmul %71, %6, %cst_25 {dimension_numbers = #tpu.dot_dimension_numbers<[1], [0], [0], [1], [0, 0, 1, 1], [], []>} : vector<2x64xf32>, vector<64x256xf32>, vector<2x256xf32> -> vector<2x256xf32>
    %73 = arith.addf %72, %9 : vector<2x256xf32>
    %74 = vector.extract_strided_slice %73 {offsets = [0, 0], sizes = [2, 128], strides = [1, 1]} : vector<2x256xf32> to vector<2x128xf32>
    %75 = vector.extract_strided_slice %5 {offsets = [4, 0], sizes = [2, 128], strides = [1, 1]} : vector<16x128xf32> to vector<2x128xf32>
    %76 = arith.addf %74, %75 : vector<2x128xf32>
    %77 = math.tanh %76 : vector<2x128xf32>
    %78 = vector.extract_strided_slice %77 {offsets = [0, 0], sizes = [2, 32], strides = [1, 1]} : vector<2x128xf32> to vector<2x32xf32>
    %cst_26 = arith.constant 5.000000e-01 : f32
    %79 = vector.broadcast %cst_26 : f32 to vector<2x32xf32>
    %80 = arith.mulf %79, %78 : vector<2x32xf32>
    %cst_27 = arith.constant 5.000000e-01 : f32
    %81 = vector.broadcast %cst_27 : f32 to vector<2x32xf32>
    %82 = arith.addf %80, %81 : vector<2x32xf32>
    %83 = vector.extract_strided_slice %77 {offsets = [0, 32], sizes = [2, 32], strides = [1, 1]} : vector<2x128xf32> to vector<2x32xf32>
    %cst_28 = arith.constant 5.000000e-01 : f32
    %84 = vector.broadcast %cst_28 : f32 to vector<2x32xf32>
    %85 = arith.mulf %84, %83 : vector<2x32xf32>
    %cst_29 = arith.constant 5.000000e-01 : f32
    %86 = vector.broadcast %cst_29 : f32 to vector<2x32xf32>
    %87 = arith.addf %85, %86 : vector<2x32xf32>
    %88 = vector.extract_strided_slice %77 {offsets = [0, 64], sizes = [2, 32], strides = [1, 1]} : vector<2x128xf32> to vector<2x32xf32>
    %89 = vector.extract_strided_slice %77 {offsets = [0, 96], sizes = [2, 32], strides = [1, 1]} : vector<2x128xf32> to vector<2x32xf32>
    %cst_30 = arith.constant 5.000000e-01 : f32
    %90 = vector.broadcast %cst_30 : f32 to vector<2x32xf32>
    %91 = arith.mulf %90, %89 : vector<2x32xf32>
    %cst_31 = arith.constant 5.000000e-01 : f32
    %92 = vector.broadcast %cst_31 : f32 to vector<2x32xf32>
    %93 = arith.addf %91, %92 : vector<2x32xf32>
    %94 = arith.mulf %87, %52 : vector<2x32xf32>
    %95 = arith.mulf %82, %88 : vector<2x32xf32>
    %96 = arith.addf %94, %95 : vector<2x32xf32>
    %97 = math.tanh %96 : vector<2x32xf32>
    %98 = arith.mulf %93, %97 : vector<2x32xf32>
    %99 = vector.extract_strided_slice %73 {offsets = [0, 128], sizes = [2, 128], strides = [1, 1]} : vector<2x256xf32> to vector<2x128xf32>
    %100 = math.tanh %99 : vector<2x128xf32>
    %101 = vector.extract_strided_slice %100 {offsets = [0, 0], sizes = [2, 32], strides = [1, 1]} : vector<2x128xf32> to vector<2x32xf32>
    %cst_32 = arith.constant 5.000000e-01 : f32
    %102 = vector.broadcast %cst_32 : f32 to vector<2x32xf32>
    %103 = arith.mulf %102, %101 : vector<2x32xf32>
    %cst_33 = arith.constant 5.000000e-01 : f32
    %104 = vector.broadcast %cst_33 : f32 to vector<2x32xf32>
    %105 = arith.addf %103, %104 : vector<2x32xf32>
    %106 = vector.extract_strided_slice %100 {offsets = [0, 32], sizes = [2, 32], strides = [1, 1]} : vector<2x128xf32> to vector<2x32xf32>
    %cst_34 = arith.constant 5.000000e-01 : f32
    %107 = vector.broadcast %cst_34 : f32 to vector<2x32xf32>
    %108 = arith.mulf %107, %106 : vector<2x32xf32>
    %cst_35 = arith.constant 5.000000e-01 : f32
    %109 = vector.broadcast %cst_35 : f32 to vector<2x32xf32>
    %110 = arith.addf %108, %109 : vector<2x32xf32>
    %111 = vector.extract_strided_slice %100 {offsets = [0, 64], sizes = [2, 32], strides = [1, 1]} : vector<2x128xf32> to vector<2x32xf32>
    %112 = vector.extract_strided_slice %100 {offsets = [0, 96], sizes = [2, 32], strides = [1, 1]} : vector<2x128xf32> to vector<2x32xf32>
    %cst_36 = arith.constant 5.000000e-01 : f32
    %113 = vector.broadcast %cst_36 : f32 to vector<2x32xf32>
    %114 = arith.mulf %113, %112 : vector<2x32xf32>
    %cst_37 = arith.constant 5.000000e-01 : f32
    %115 = vector.broadcast %cst_37 : f32 to vector<2x32xf32>
    %116 = arith.addf %114, %115 : vector<2x32xf32>
    %117 = arith.mulf %110, %68 : vector<2x32xf32>
    %118 = arith.mulf %105, %111 : vector<2x32xf32>
    %119 = arith.addf %117, %118 : vector<2x32xf32>
    %120 = math.tanh %119 : vector<2x32xf32>
    %121 = arith.mulf %116, %120 : vector<2x32xf32>
    %122 = tpu.concatenate %98, %121 in 1 : vector<2x32xf32>, vector<2x32xf32> -> vector<2x64xf32>
    %cst_38 = arith.constant dense<0.000000e+00> : vector<2x256xf32>
    %123 = tpu.matmul %122, %6, %cst_38 {dimension_numbers = #tpu.dot_dimension_numbers<[1], [0], [0], [1], [0, 0, 1, 1], [], []>} : vector<2x64xf32>, vector<64x256xf32>, vector<2x256xf32> -> vector<2x256xf32>
    %124 = arith.addf %123, %9 : vector<2x256xf32>
    %125 = vector.extract_strided_slice %124 {offsets = [0, 0], sizes = [2, 128], strides = [1, 1]} : vector<2x256xf32> to vector<2x128xf32>
    %126 = vector.extract_strided_slice %5 {offsets = [6, 0], sizes = [2, 128], strides = [1, 1]} : vector<16x128xf32> to vector<2x128xf32>
    %127 = arith.addf %125, %126 : vector<2x128xf32>
    %128 = math.tanh %127 : vector<2x128xf32>
    %129 = vector.extract_strided_slice %128 {offsets = [0, 0], sizes = [2, 32], strides = [1, 1]} : vector<2x128xf32> to vector<2x32xf32>
    %cst_39 = arith.constant 5.000000e-01 : f32
    %130 = vector.broadcast %cst_39 : f32 to vector<2x32xf32>
    %131 = arith.mulf %130, %129 : vector<2x32xf32>
    %cst_40 = arith.constant 5.000000e-01 : f32
    %132 = vector.broadcast %cst_40 : f32 to vector<2x32xf32>
    %133 = arith.addf %131, %132 : vector<2x32xf32>
    %134 = vector.extract_strided_slice %128 {offsets = [0, 32], sizes = [2, 32], strides = [1, 1]} : vector<2x128xf32> to vector<2x32xf32>
    %cst_41 = arith.constant 5.000000e-01 : f32
    %135 = vector.broadcast %cst_41 : f32 to vector<2x32xf32>
    %136 = arith.mulf %135, %134 : vector<2x32xf32>
    %cst_42 = arith.constant 5.000000e-01 : f32
    %137 = vector.broadcast %cst_42 : f32 to vector<2x32xf32>
    %138 = arith.addf %136, %137 : vector<2x32xf32>
    %139 = vector.extract_strided_slice %128 {offsets = [0, 64], sizes = [2, 32], strides = [1, 1]} : vector<2x128xf32> to vector<2x32xf32>
    %140 = vector.extract_strided_slice %128 {offsets = [0, 96], sizes = [2, 32], strides = [1, 1]} : vector<2x128xf32> to vector<2x32xf32>
    %cst_43 = arith.constant 5.000000e-01 : f32
    %141 = vector.broadcast %cst_43 : f32 to vector<2x32xf32>
    %142 = arith.mulf %141, %140 : vector<2x32xf32>
    %cst_44 = arith.constant 5.000000e-01 : f32
    %143 = vector.broadcast %cst_44 : f32 to vector<2x32xf32>
    %144 = arith.addf %142, %143 : vector<2x32xf32>
    %145 = arith.mulf %138, %96 : vector<2x32xf32>
    %146 = arith.mulf %133, %139 : vector<2x32xf32>
    %147 = arith.addf %145, %146 : vector<2x32xf32>
    %148 = math.tanh %147 : vector<2x32xf32>
    %149 = arith.mulf %144, %148 : vector<2x32xf32>
    %150 = vector.extract_strided_slice %124 {offsets = [0, 128], sizes = [2, 128], strides = [1, 1]} : vector<2x256xf32> to vector<2x128xf32>
    %151 = math.tanh %150 : vector<2x128xf32>
    %152 = vector.extract_strided_slice %151 {offsets = [0, 0], sizes = [2, 32], strides = [1, 1]} : vector<2x128xf32> to vector<2x32xf32>
    %cst_45 = arith.constant 5.000000e-01 : f32
    %153 = vector.broadcast %cst_45 : f32 to vector<2x32xf32>
    %154 = arith.mulf %153, %152 : vector<2x32xf32>
    %cst_46 = arith.constant 5.000000e-01 : f32
    %155 = vector.broadcast %cst_46 : f32 to vector<2x32xf32>
    %156 = arith.addf %154, %155 : vector<2x32xf32>
    %157 = vector.extract_strided_slice %151 {offsets = [0, 32], sizes = [2, 32], strides = [1, 1]} : vector<2x128xf32> to vector<2x32xf32>
    %cst_47 = arith.constant 5.000000e-01 : f32
    %158 = vector.broadcast %cst_47 : f32 to vector<2x32xf32>
    %159 = arith.mulf %158, %157 : vector<2x32xf32>
    %cst_48 = arith.constant 5.000000e-01 : f32
    %160 = vector.broadcast %cst_48 : f32 to vector<2x32xf32>
    %161 = arith.addf %159, %160 : vector<2x32xf32>
    %162 = vector.extract_strided_slice %151 {offsets = [0, 64], sizes = [2, 32], strides = [1, 1]} : vector<2x128xf32> to vector<2x32xf32>
    %163 = vector.extract_strided_slice %151 {offsets = [0, 96], sizes = [2, 32], strides = [1, 1]} : vector<2x128xf32> to vector<2x32xf32>
    %cst_49 = arith.constant 5.000000e-01 : f32
    %164 = vector.broadcast %cst_49 : f32 to vector<2x32xf32>
    %165 = arith.mulf %164, %163 : vector<2x32xf32>
    %cst_50 = arith.constant 5.000000e-01 : f32
    %166 = vector.broadcast %cst_50 : f32 to vector<2x32xf32>
    %167 = arith.addf %165, %166 : vector<2x32xf32>
    %168 = arith.mulf %161, %119 : vector<2x32xf32>
    %169 = arith.mulf %156, %162 : vector<2x32xf32>
    %170 = arith.addf %168, %169 : vector<2x32xf32>
    %171 = math.tanh %170 : vector<2x32xf32>
    %172 = arith.mulf %167, %171 : vector<2x32xf32>
    %173 = tpu.concatenate %149, %172 in 1 : vector<2x32xf32>, vector<2x32xf32> -> vector<2x64xf32>
    %cst_51 = arith.constant dense<0.000000e+00> : vector<2x256xf32>
    %174 = tpu.matmul %173, %6, %cst_51 {dimension_numbers = #tpu.dot_dimension_numbers<[1], [0], [0], [1], [0, 0, 1, 1], [], []>} : vector<2x64xf32>, vector<64x256xf32>, vector<2x256xf32> -> vector<2x256xf32>
    %175 = arith.addf %174, %9 : vector<2x256xf32>
    %176 = vector.extract_strided_slice %175 {offsets = [0, 0], sizes = [2, 128], strides = [1, 1]} : vector<2x256xf32> to vector<2x128xf32>
    %177 = vector.extract_strided_slice %5 {offsets = [8, 0], sizes = [2, 128], strides = [1, 1]} : vector<16x128xf32> to vector<2x128xf32>
    %178 = arith.addf %176, %177 : vector<2x128xf32>
    %179 = math.tanh %178 : vector<2x128xf32>
    %180 = vector.extract_strided_slice %179 {offsets = [0, 0], sizes = [2, 32], strides = [1, 1]} : vector<2x128xf32> to vector<2x32xf32>
    %cst_52 = arith.constant 5.000000e-01 : f32
    %181 = vector.broadcast %cst_52 : f32 to vector<2x32xf32>
    %182 = arith.mulf %181, %180 : vector<2x32xf32>
    %cst_53 = arith.constant 5.000000e-01 : f32
    %183 = vector.broadcast %cst_53 : f32 to vector<2x32xf32>
    %184 = arith.addf %182, %183 : vector<2x32xf32>
    %185 = vector.extract_strided_slice %179 {offsets = [0, 32], sizes = [2, 32], strides = [1, 1]} : vector<2x128xf32> to vector<2x32xf32>
    %cst_54 = arith.constant 5.000000e-01 : f32
    %186 = vector.broadcast %cst_54 : f32 to vector<2x32xf32>
    %187 = arith.mulf %186, %185 : vector<2x32xf32>
    %cst_55 = arith.constant 5.000000e-01 : f32
    %188 = vector.broadcast %cst_55 : f32 to vector<2x32xf32>
    %189 = arith.addf %187, %188 : vector<2x32xf32>
    %190 = vector.extract_strided_slice %179 {offsets = [0, 64], sizes = [2, 32], strides = [1, 1]} : vector<2x128xf32> to vector<2x32xf32>
    %191 = vector.extract_strided_slice %179 {offsets = [0, 96], sizes = [2, 32], strides = [1, 1]} : vector<2x128xf32> to vector<2x32xf32>
    %cst_56 = arith.constant 5.000000e-01 : f32
    %192 = vector.broadcast %cst_56 : f32 to vector<2x32xf32>
    %193 = arith.mulf %192, %191 : vector<2x32xf32>
    %cst_57 = arith.constant 5.000000e-01 : f32
    %194 = vector.broadcast %cst_57 : f32 to vector<2x32xf32>
    %195 = arith.addf %193, %194 : vector<2x32xf32>
    %196 = arith.mulf %189, %147 : vector<2x32xf32>
    %197 = arith.mulf %184, %190 : vector<2x32xf32>
    %198 = arith.addf %196, %197 : vector<2x32xf32>
    %199 = math.tanh %198 : vector<2x32xf32>
    %200 = arith.mulf %195, %199 : vector<2x32xf32>
    %201 = vector.extract_strided_slice %175 {offsets = [0, 128], sizes = [2, 128], strides = [1, 1]} : vector<2x256xf32> to vector<2x128xf32>
    %202 = math.tanh %201 : vector<2x128xf32>
    %203 = vector.extract_strided_slice %202 {offsets = [0, 0], sizes = [2, 32], strides = [1, 1]} : vector<2x128xf32> to vector<2x32xf32>
    %cst_58 = arith.constant 5.000000e-01 : f32
    %204 = vector.broadcast %cst_58 : f32 to vector<2x32xf32>
    %205 = arith.mulf %204, %203 : vector<2x32xf32>
    %cst_59 = arith.constant 5.000000e-01 : f32
    %206 = vector.broadcast %cst_59 : f32 to vector<2x32xf32>
    %207 = arith.addf %205, %206 : vector<2x32xf32>
    %208 = vector.extract_strided_slice %202 {offsets = [0, 32], sizes = [2, 32], strides = [1, 1]} : vector<2x128xf32> to vector<2x32xf32>
    %cst_60 = arith.constant 5.000000e-01 : f32
    %209 = vector.broadcast %cst_60 : f32 to vector<2x32xf32>
    %210 = arith.mulf %209, %208 : vector<2x32xf32>
    %cst_61 = arith.constant 5.000000e-01 : f32
    %211 = vector.broadcast %cst_61 : f32 to vector<2x32xf32>
    %212 = arith.addf %210, %211 : vector<2x32xf32>
    %213 = vector.extract_strided_slice %202 {offsets = [0, 64], sizes = [2, 32], strides = [1, 1]} : vector<2x128xf32> to vector<2x32xf32>
    %214 = vector.extract_strided_slice %202 {offsets = [0, 96], sizes = [2, 32], strides = [1, 1]} : vector<2x128xf32> to vector<2x32xf32>
    %cst_62 = arith.constant 5.000000e-01 : f32
    %215 = vector.broadcast %cst_62 : f32 to vector<2x32xf32>
    %216 = arith.mulf %215, %214 : vector<2x32xf32>
    %cst_63 = arith.constant 5.000000e-01 : f32
    %217 = vector.broadcast %cst_63 : f32 to vector<2x32xf32>
    %218 = arith.addf %216, %217 : vector<2x32xf32>
    %219 = arith.mulf %212, %170 : vector<2x32xf32>
    %220 = arith.mulf %207, %213 : vector<2x32xf32>
    %221 = arith.addf %219, %220 : vector<2x32xf32>
    %222 = math.tanh %221 : vector<2x32xf32>
    %223 = arith.mulf %218, %222 : vector<2x32xf32>
    %224 = tpu.concatenate %200, %223 in 1 : vector<2x32xf32>, vector<2x32xf32> -> vector<2x64xf32>
    %cst_64 = arith.constant dense<0.000000e+00> : vector<2x256xf32>
    %225 = tpu.matmul %224, %6, %cst_64 {dimension_numbers = #tpu.dot_dimension_numbers<[1], [0], [0], [1], [0, 0, 1, 1], [], []>} : vector<2x64xf32>, vector<64x256xf32>, vector<2x256xf32> -> vector<2x256xf32>
    %226 = arith.addf %225, %9 : vector<2x256xf32>
    %227 = vector.extract_strided_slice %226 {offsets = [0, 0], sizes = [2, 128], strides = [1, 1]} : vector<2x256xf32> to vector<2x128xf32>
    %228 = vector.extract_strided_slice %5 {offsets = [10, 0], sizes = [2, 128], strides = [1, 1]} : vector<16x128xf32> to vector<2x128xf32>
    %229 = arith.addf %227, %228 : vector<2x128xf32>
    %230 = math.tanh %229 : vector<2x128xf32>
    %231 = vector.extract_strided_slice %230 {offsets = [0, 0], sizes = [2, 32], strides = [1, 1]} : vector<2x128xf32> to vector<2x32xf32>
    %cst_65 = arith.constant 5.000000e-01 : f32
    %232 = vector.broadcast %cst_65 : f32 to vector<2x32xf32>
    %233 = arith.mulf %232, %231 : vector<2x32xf32>
    %cst_66 = arith.constant 5.000000e-01 : f32
    %234 = vector.broadcast %cst_66 : f32 to vector<2x32xf32>
    %235 = arith.addf %233, %234 : vector<2x32xf32>
    %236 = vector.extract_strided_slice %230 {offsets = [0, 32], sizes = [2, 32], strides = [1, 1]} : vector<2x128xf32> to vector<2x32xf32>
    %cst_67 = arith.constant 5.000000e-01 : f32
    %237 = vector.broadcast %cst_67 : f32 to vector<2x32xf32>
    %238 = arith.mulf %237, %236 : vector<2x32xf32>
    %cst_68 = arith.constant 5.000000e-01 : f32
    %239 = vector.broadcast %cst_68 : f32 to vector<2x32xf32>
    %240 = arith.addf %238, %239 : vector<2x32xf32>
    %241 = vector.extract_strided_slice %230 {offsets = [0, 64], sizes = [2, 32], strides = [1, 1]} : vector<2x128xf32> to vector<2x32xf32>
    %242 = vector.extract_strided_slice %230 {offsets = [0, 96], sizes = [2, 32], strides = [1, 1]} : vector<2x128xf32> to vector<2x32xf32>
    %cst_69 = arith.constant 5.000000e-01 : f32
    %243 = vector.broadcast %cst_69 : f32 to vector<2x32xf32>
    %244 = arith.mulf %243, %242 : vector<2x32xf32>
    %cst_70 = arith.constant 5.000000e-01 : f32
    %245 = vector.broadcast %cst_70 : f32 to vector<2x32xf32>
    %246 = arith.addf %244, %245 : vector<2x32xf32>
    %247 = arith.mulf %240, %198 : vector<2x32xf32>
    %248 = arith.mulf %235, %241 : vector<2x32xf32>
    %249 = arith.addf %247, %248 : vector<2x32xf32>
    %250 = math.tanh %249 : vector<2x32xf32>
    %251 = arith.mulf %246, %250 : vector<2x32xf32>
    %252 = vector.extract_strided_slice %226 {offsets = [0, 128], sizes = [2, 128], strides = [1, 1]} : vector<2x256xf32> to vector<2x128xf32>
    %253 = math.tanh %252 : vector<2x128xf32>
    %254 = vector.extract_strided_slice %253 {offsets = [0, 0], sizes = [2, 32], strides = [1, 1]} : vector<2x128xf32> to vector<2x32xf32>
    %cst_71 = arith.constant 5.000000e-01 : f32
    %255 = vector.broadcast %cst_71 : f32 to vector<2x32xf32>
    %256 = arith.mulf %255, %254 : vector<2x32xf32>
    %cst_72 = arith.constant 5.000000e-01 : f32
    %257 = vector.broadcast %cst_72 : f32 to vector<2x32xf32>
    %258 = arith.addf %256, %257 : vector<2x32xf32>
    %259 = vector.extract_strided_slice %253 {offsets = [0, 32], sizes = [2, 32], strides = [1, 1]} : vector<2x128xf32> to vector<2x32xf32>
    %cst_73 = arith.constant 5.000000e-01 : f32
    %260 = vector.broadcast %cst_73 : f32 to vector<2x32xf32>
    %261 = arith.mulf %260, %259 : vector<2x32xf32>
    %cst_74 = arith.constant 5.000000e-01 : f32
    %262 = vector.broadcast %cst_74 : f32 to vector<2x32xf32>
    %263 = arith.addf %261, %262 : vector<2x32xf32>
    %264 = vector.extract_strided_slice %253 {offsets = [0, 64], sizes = [2, 32], strides = [1, 1]} : vector<2x128xf32> to vector<2x32xf32>
    %265 = vector.extract_strided_slice %253 {offsets = [0, 96], sizes = [2, 32], strides = [1, 1]} : vector<2x128xf32> to vector<2x32xf32>
    %cst_75 = arith.constant 5.000000e-01 : f32
    %266 = vector.broadcast %cst_75 : f32 to vector<2x32xf32>
    %267 = arith.mulf %266, %265 : vector<2x32xf32>
    %cst_76 = arith.constant 5.000000e-01 : f32
    %268 = vector.broadcast %cst_76 : f32 to vector<2x32xf32>
    %269 = arith.addf %267, %268 : vector<2x32xf32>
    %270 = arith.mulf %263, %221 : vector<2x32xf32>
    %271 = arith.mulf %258, %264 : vector<2x32xf32>
    %272 = arith.addf %270, %271 : vector<2x32xf32>
    %273 = math.tanh %272 : vector<2x32xf32>
    %274 = arith.mulf %269, %273 : vector<2x32xf32>
    %275 = tpu.concatenate %251, %274 in 1 : vector<2x32xf32>, vector<2x32xf32> -> vector<2x64xf32>
    %cst_77 = arith.constant dense<0.000000e+00> : vector<2x256xf32>
    %276 = tpu.matmul %275, %6, %cst_77 {dimension_numbers = #tpu.dot_dimension_numbers<[1], [0], [0], [1], [0, 0, 1, 1], [], []>} : vector<2x64xf32>, vector<64x256xf32>, vector<2x256xf32> -> vector<2x256xf32>
    %277 = arith.addf %276, %9 : vector<2x256xf32>
    %278 = vector.extract_strided_slice %277 {offsets = [0, 0], sizes = [2, 128], strides = [1, 1]} : vector<2x256xf32> to vector<2x128xf32>
    %279 = vector.extract_strided_slice %5 {offsets = [12, 0], sizes = [2, 128], strides = [1, 1]} : vector<16x128xf32> to vector<2x128xf32>
    %280 = arith.addf %278, %279 : vector<2x128xf32>
    %281 = math.tanh %280 : vector<2x128xf32>
    %282 = vector.extract_strided_slice %281 {offsets = [0, 0], sizes = [2, 32], strides = [1, 1]} : vector<2x128xf32> to vector<2x32xf32>
    %cst_78 = arith.constant 5.000000e-01 : f32
    %283 = vector.broadcast %cst_78 : f32 to vector<2x32xf32>
    %284 = arith.mulf %283, %282 : vector<2x32xf32>
    %cst_79 = arith.constant 5.000000e-01 : f32
    %285 = vector.broadcast %cst_79 : f32 to vector<2x32xf32>
    %286 = arith.addf %284, %285 : vector<2x32xf32>
    %287 = vector.extract_strided_slice %281 {offsets = [0, 32], sizes = [2, 32], strides = [1, 1]} : vector<2x128xf32> to vector<2x32xf32>
    %cst_80 = arith.constant 5.000000e-01 : f32
    %288 = vector.broadcast %cst_80 : f32 to vector<2x32xf32>
    %289 = arith.mulf %288, %287 : vector<2x32xf32>
    %cst_81 = arith.constant 5.000000e-01 : f32
    %290 = vector.broadcast %cst_81 : f32 to vector<2x32xf32>
    %291 = arith.addf %289, %290 : vector<2x32xf32>
    %292 = vector.extract_strided_slice %281 {offsets = [0, 64], sizes = [2, 32], strides = [1, 1]} : vector<2x128xf32> to vector<2x32xf32>
    %293 = vector.extract_strided_slice %281 {offsets = [0, 96], sizes = [2, 32], strides = [1, 1]} : vector<2x128xf32> to vector<2x32xf32>
    %cst_82 = arith.constant 5.000000e-01 : f32
    %294 = vector.broadcast %cst_82 : f32 to vector<2x32xf32>
    %295 = arith.mulf %294, %293 : vector<2x32xf32>
    %cst_83 = arith.constant 5.000000e-01 : f32
    %296 = vector.broadcast %cst_83 : f32 to vector<2x32xf32>
    %297 = arith.addf %295, %296 : vector<2x32xf32>
    %298 = arith.mulf %291, %249 : vector<2x32xf32>
    %299 = arith.mulf %286, %292 : vector<2x32xf32>
    %300 = arith.addf %298, %299 : vector<2x32xf32>
    %301 = math.tanh %300 : vector<2x32xf32>
    %302 = arith.mulf %297, %301 : vector<2x32xf32>
    %303 = vector.extract_strided_slice %277 {offsets = [0, 128], sizes = [2, 128], strides = [1, 1]} : vector<2x256xf32> to vector<2x128xf32>
    %304 = math.tanh %303 : vector<2x128xf32>
    %305 = vector.extract_strided_slice %304 {offsets = [0, 0], sizes = [2, 32], strides = [1, 1]} : vector<2x128xf32> to vector<2x32xf32>
    %cst_84 = arith.constant 5.000000e-01 : f32
    %306 = vector.broadcast %cst_84 : f32 to vector<2x32xf32>
    %307 = arith.mulf %306, %305 : vector<2x32xf32>
    %cst_85 = arith.constant 5.000000e-01 : f32
    %308 = vector.broadcast %cst_85 : f32 to vector<2x32xf32>
    %309 = arith.addf %307, %308 : vector<2x32xf32>
    %310 = vector.extract_strided_slice %304 {offsets = [0, 32], sizes = [2, 32], strides = [1, 1]} : vector<2x128xf32> to vector<2x32xf32>
    %cst_86 = arith.constant 5.000000e-01 : f32
    %311 = vector.broadcast %cst_86 : f32 to vector<2x32xf32>
    %312 = arith.mulf %311, %310 : vector<2x32xf32>
    %cst_87 = arith.constant 5.000000e-01 : f32
    %313 = vector.broadcast %cst_87 : f32 to vector<2x32xf32>
    %314 = arith.addf %312, %313 : vector<2x32xf32>
    %315 = vector.extract_strided_slice %304 {offsets = [0, 64], sizes = [2, 32], strides = [1, 1]} : vector<2x128xf32> to vector<2x32xf32>
    %316 = vector.extract_strided_slice %304 {offsets = [0, 96], sizes = [2, 32], strides = [1, 1]} : vector<2x128xf32> to vector<2x32xf32>
    %cst_88 = arith.constant 5.000000e-01 : f32
    %317 = vector.broadcast %cst_88 : f32 to vector<2x32xf32>
    %318 = arith.mulf %317, %316 : vector<2x32xf32>
    %cst_89 = arith.constant 5.000000e-01 : f32
    %319 = vector.broadcast %cst_89 : f32 to vector<2x32xf32>
    %320 = arith.addf %318, %319 : vector<2x32xf32>
    %321 = arith.mulf %314, %272 : vector<2x32xf32>
    %322 = arith.mulf %309, %315 : vector<2x32xf32>
    %323 = arith.addf %321, %322 : vector<2x32xf32>
    %324 = math.tanh %323 : vector<2x32xf32>
    %325 = arith.mulf %320, %324 : vector<2x32xf32>
    %326 = tpu.concatenate %302, %325 in 1 : vector<2x32xf32>, vector<2x32xf32> -> vector<2x64xf32>
    %cst_90 = arith.constant dense<0.000000e+00> : vector<2x256xf32>
    %327 = tpu.matmul %326, %6, %cst_90 {dimension_numbers = #tpu.dot_dimension_numbers<[1], [0], [0], [1], [0, 0, 1, 1], [], []>} : vector<2x64xf32>, vector<64x256xf32>, vector<2x256xf32> -> vector<2x256xf32>
    %328 = arith.addf %327, %9 : vector<2x256xf32>
    %329 = vector.extract_strided_slice %328 {offsets = [0, 0], sizes = [2, 128], strides = [1, 1]} : vector<2x256xf32> to vector<2x128xf32>
    %330 = vector.extract_strided_slice %5 {offsets = [14, 0], sizes = [2, 128], strides = [1, 1]} : vector<16x128xf32> to vector<2x128xf32>
    %331 = arith.addf %329, %330 : vector<2x128xf32>
    %332 = math.tanh %331 : vector<2x128xf32>
    %333 = vector.extract_strided_slice %332 {offsets = [0, 0], sizes = [2, 32], strides = [1, 1]} : vector<2x128xf32> to vector<2x32xf32>
    %cst_91 = arith.constant 5.000000e-01 : f32
    %334 = vector.broadcast %cst_91 : f32 to vector<2x32xf32>
    %335 = arith.mulf %334, %333 : vector<2x32xf32>
    %cst_92 = arith.constant 5.000000e-01 : f32
    %336 = vector.broadcast %cst_92 : f32 to vector<2x32xf32>
    %337 = arith.addf %335, %336 : vector<2x32xf32>
    %338 = vector.extract_strided_slice %332 {offsets = [0, 32], sizes = [2, 32], strides = [1, 1]} : vector<2x128xf32> to vector<2x32xf32>
    %cst_93 = arith.constant 5.000000e-01 : f32
    %339 = vector.broadcast %cst_93 : f32 to vector<2x32xf32>
    %340 = arith.mulf %339, %338 : vector<2x32xf32>
    %cst_94 = arith.constant 5.000000e-01 : f32
    %341 = vector.broadcast %cst_94 : f32 to vector<2x32xf32>
    %342 = arith.addf %340, %341 : vector<2x32xf32>
    %343 = vector.extract_strided_slice %332 {offsets = [0, 64], sizes = [2, 32], strides = [1, 1]} : vector<2x128xf32> to vector<2x32xf32>
    %344 = vector.extract_strided_slice %332 {offsets = [0, 96], sizes = [2, 32], strides = [1, 1]} : vector<2x128xf32> to vector<2x32xf32>
    %cst_95 = arith.constant 5.000000e-01 : f32
    %345 = vector.broadcast %cst_95 : f32 to vector<2x32xf32>
    %346 = arith.mulf %345, %344 : vector<2x32xf32>
    %cst_96 = arith.constant 5.000000e-01 : f32
    %347 = vector.broadcast %cst_96 : f32 to vector<2x32xf32>
    %348 = arith.addf %346, %347 : vector<2x32xf32>
    %349 = arith.mulf %342, %300 : vector<2x32xf32>
    %350 = arith.mulf %337, %343 : vector<2x32xf32>
    %351 = arith.addf %349, %350 : vector<2x32xf32>
    %352 = math.tanh %351 : vector<2x32xf32>
    %353 = arith.mulf %348, %352 : vector<2x32xf32>
    %354 = vector.extract_strided_slice %328 {offsets = [0, 128], sizes = [2, 128], strides = [1, 1]} : vector<2x256xf32> to vector<2x128xf32>
    %355 = math.tanh %354 : vector<2x128xf32>
    %356 = vector.extract_strided_slice %355 {offsets = [0, 0], sizes = [2, 32], strides = [1, 1]} : vector<2x128xf32> to vector<2x32xf32>
    %cst_97 = arith.constant 5.000000e-01 : f32
    %357 = vector.broadcast %cst_97 : f32 to vector<2x32xf32>
    %358 = arith.mulf %357, %356 : vector<2x32xf32>
    %cst_98 = arith.constant 5.000000e-01 : f32
    %359 = vector.broadcast %cst_98 : f32 to vector<2x32xf32>
    %360 = arith.addf %358, %359 : vector<2x32xf32>
    %361 = vector.extract_strided_slice %355 {offsets = [0, 32], sizes = [2, 32], strides = [1, 1]} : vector<2x128xf32> to vector<2x32xf32>
    %cst_99 = arith.constant 5.000000e-01 : f32
    %362 = vector.broadcast %cst_99 : f32 to vector<2x32xf32>
    %363 = arith.mulf %362, %361 : vector<2x32xf32>
    %cst_100 = arith.constant 5.000000e-01 : f32
    %364 = vector.broadcast %cst_100 : f32 to vector<2x32xf32>
    %365 = arith.addf %363, %364 : vector<2x32xf32>
    %366 = vector.extract_strided_slice %355 {offsets = [0, 64], sizes = [2, 32], strides = [1, 1]} : vector<2x128xf32> to vector<2x32xf32>
    %367 = vector.extract_strided_slice %355 {offsets = [0, 96], sizes = [2, 32], strides = [1, 1]} : vector<2x128xf32> to vector<2x32xf32>
    %cst_101 = arith.constant 5.000000e-01 : f32
    %368 = vector.broadcast %cst_101 : f32 to vector<2x32xf32>
    %369 = arith.mulf %368, %367 : vector<2x32xf32>
    %cst_102 = arith.constant 5.000000e-01 : f32
    %370 = vector.broadcast %cst_102 : f32 to vector<2x32xf32>
    %371 = arith.addf %369, %370 : vector<2x32xf32>
    %372 = arith.mulf %365, %323 : vector<2x32xf32>
    %373 = arith.mulf %360, %366 : vector<2x32xf32>
    %374 = arith.addf %372, %373 : vector<2x32xf32>
    %375 = math.tanh %374 : vector<2x32xf32>
    %376 = arith.mulf %371, %375 : vector<2x32xf32>
    %377 = tpu.concatenate %353, %376 in 1 : vector<2x32xf32>, vector<2x32xf32> -> vector<2x64xf32>
    %cst_103 = arith.constant dense<0.000000e+00> : vector<2x256xf32>
    %378 = tpu.matmul %377, %6, %cst_103 {dimension_numbers = #tpu.dot_dimension_numbers<[1], [0], [0], [1], [0, 0, 1, 1], [], []>} : vector<2x64xf32>, vector<64x256xf32>, vector<2x256xf32> -> vector<2x256xf32>
    %379 = arith.addf %378, %9 : vector<2x256xf32>
    %380 = vector.extract_strided_slice %379 {offsets = [0, 128], sizes = [2, 128], strides = [1, 1]} : vector<2x256xf32> to vector<2x128xf32>
    %381 = math.tanh %380 : vector<2x128xf32>
    %382 = vector.extract_strided_slice %381 {offsets = [0, 0], sizes = [2, 32], strides = [1, 1]} : vector<2x128xf32> to vector<2x32xf32>
    %cst_104 = arith.constant 5.000000e-01 : f32
    %383 = vector.broadcast %cst_104 : f32 to vector<2x32xf32>
    %384 = arith.mulf %383, %382 : vector<2x32xf32>
    %cst_105 = arith.constant 5.000000e-01 : f32
    %385 = vector.broadcast %cst_105 : f32 to vector<2x32xf32>
    %386 = arith.addf %384, %385 : vector<2x32xf32>
    %387 = vector.extract_strided_slice %381 {offsets = [0, 32], sizes = [2, 32], strides = [1, 1]} : vector<2x128xf32> to vector<2x32xf32>
    %cst_106 = arith.constant 5.000000e-01 : f32
    %388 = vector.broadcast %cst_106 : f32 to vector<2x32xf32>
    %389 = arith.mulf %388, %387 : vector<2x32xf32>
    %cst_107 = arith.constant 5.000000e-01 : f32
    %390 = vector.broadcast %cst_107 : f32 to vector<2x32xf32>
    %391 = arith.addf %389, %390 : vector<2x32xf32>
    %392 = vector.extract_strided_slice %381 {offsets = [0, 64], sizes = [2, 32], strides = [1, 1]} : vector<2x128xf32> to vector<2x32xf32>
    %393 = vector.extract_strided_slice %381 {offsets = [0, 96], sizes = [2, 32], strides = [1, 1]} : vector<2x128xf32> to vector<2x32xf32>
    %cst_108 = arith.constant 5.000000e-01 : f32
    %394 = vector.broadcast %cst_108 : f32 to vector<2x32xf32>
    %395 = arith.mulf %394, %393 : vector<2x32xf32>
    %cst_109 = arith.constant 5.000000e-01 : f32
    %396 = vector.broadcast %cst_109 : f32 to vector<2x32xf32>
    %397 = arith.addf %395, %396 : vector<2x32xf32>
    %398 = arith.mulf %391, %374 : vector<2x32xf32>
    %399 = arith.mulf %386, %392 : vector<2x32xf32>
    %400 = arith.addf %398, %399 : vector<2x32xf32>
    %401 = math.tanh %400 : vector<2x32xf32>
    %402 = arith.mulf %397, %401 : vector<2x32xf32>
    %c0_110 = arith.constant 0 : index
    %c0_111 = arith.constant 0 : index
    %403 = vector.load %arg5[%c0_110, %c0_111] : memref<32x128xf32, #tpu.memory_space<vmem>>, vector<32x128xf32>
    %cst_112 = arith.constant dense<0.000000e+00> : vector<2x128xf32>
    %404 = tpu.matmul %402, %403, %cst_112 {dimension_numbers = #tpu.dot_dimension_numbers<[1], [0], [0], [1], [0, 0, 1, 1], [], []>} : vector<2x32xf32>, vector<32x128xf32>, vector<2x128xf32> -> vector<2x128xf32>
    %c0_113 = arith.constant 0 : index
    %c0_114 = arith.constant 0 : index
    %405 = vector.load %arg6[%c0_113, %c0_114] : memref<1x128xf32, #tpu.memory_space<vmem>>, vector<1x128xf32>
    %406 = vector.broadcast %405 : vector<1x128xf32> to vector<2x128xf32>
    %407 = arith.addf %404, %406 : vector<2x128xf32>
    %c0_115 = arith.constant 0 : index
    %c0_116 = arith.constant 0 : index
    %408 = vector.load %arg7[%c0_115, %c0_116] : memref<2x128xf32, #tpu.memory_space<vmem>>, vector<2x128xf32>
    tpu.vector_store %arg7[%c0_115, %c0_116], %407 {strides = array<i32>} : memref<2x128xf32, #tpu.memory_space<vmem>>, vector<2x128xf32>,
    return
  }
}

</mosaic_0001>

<bundles_post_ra>
// kernel: vae_encoder_forward.1
= control target key start
LH: loop header
LB: loop body
LE: loop exit
PB: predicated region body
PF: predicated region fallthrough
CT: control target
= control target key end

     0   :  { %vm43_vm0 = vcmask 1043456   ;;  %vm36_vm1 = vcmask 31744   ;;  %s1482_s10 = smov 96   ;;  %s1483_s15 = smov 32   ;;  %v1484_v38 = vmov 0.0   ;;  %vm168_vm2 = vcmask 261120   ;;  %s1809_s1 = inlined_call_operand.vmem [shape: f32[4,128], index: 1, kind: input, shape index: {}]   ;;  %s1810_s0 = inlined_call_operand.vmem [shape: f32[16,4], index: 0, kind: input, shape index: {}]   ;;  %s1811_s2 = inlined_call_operand.vmem [shape: f32[1,128], index: 2, kind: input, shape index: {}]   ;;  %s1812_s3 = inlined_call_operand.vmem [shape: f32[64,256], index: 3, kind: input, shape index: {}]   ;;  %s1813_s4 = inlined_call_operand.vmem [shape: f32[1,256], index: 4, kind: input, shape index: {}]   ;;  %s1814_s5 = inlined_call_operand.vmem [shape: f32[32,128], index: 5, kind: input, shape index: {}]   ;;  %s1815_s6 = inlined_call_operand.vmem [shape: f32[1,128], index: 6, kind: input, shape index: {}]   ;;  %s1816_s7 = inlined_call_operand.vmem [shape: f32[2,128], index: 7, kind: output, shape index: {}]  }
   0x1   :  { %v28_v0 = vld [vmem:[%s1809_s1] sm:$0xf]  ;;  %v27_v2 = vld [vmem:[%s1810_s0 + $0x8] sm:$0xff]  ;;  %s1481_s1 = smov 64   ;;  %v125_v14 = vld [vmem:[%s1812_s3 + $0x18] sm:$0xff]  ;;  %238 = vmatprep.mubr.f32.mxu1 %v1484_v38  ;;  %vm170_vm3 = vcmask 523264   ;;  %v140_v43 = vlaneseq }
   0x2   :  { %v26_v1 = vld [vmem:[%s1810_s0] sm:$0xff]  ;;  %1261 = vmatprep.subr.msk.mxu0 %vm43_vm0, %v28_v0  ;;  %v123_v13 = vld [vmem:[%s1812_s3 + $0x8] sm:$0xff]  ;;  %v124_v17 = vld [vmem:[%s1812_s3 + $0x10] sm:$0xff]  ;;  %vm1486_vm4 = vmmov 0  }
   0x3   :  { %1263 = vmatprep.mubr.msk.f32.mxu0 %vm36_vm1, %v26_v1  ;;  %1262 = vmatpush3.msk.msra.mxu0 %vm43_vm0, %v28_v0  ;;  %v1239_v3 = vld [vmem:[%s1811_s2] ss:$0 sm:$0xff]  ;;  %v1554_v16 = vpack.c.bf16 %v125_v14, %v123_v13  ;;  %v127_v18 = vld [vmem:[%s1812_s3 + $0x28] sm:$0xff]  ;;  %v129_v19 = vld [vmem:[%s1812_s3 + $0x38] sm:$0xff]  ;;  %v141_v44 = vshrl.u32 %v140_v43, 7 }
   0x4   :  { %1264 = vmatmul.mubr.msk.f32.vlgmr.msra.gmra.mrb[0].mxu0 %vm36_vm1, %v27_v2  ;;  %v122_v15 = vld [vmem:[%s1812_s3] sm:$0xff]  ;;  %v1567_v21 = vpack.c.bf16 %v129_v19, %v127_v18  ;;  %v128_v23 = vld [vmem:[%s1812_s3 + $0x30] sm:$0xff]  ;;  %v131_v24 = vld [vmem:[%s1812_s3 + $0x48] sm:$0xff] }
   0x5   :  { %v1565_v20 = vpack.c.bf16 %v124_v17, %v122_v15  ;;  %v126_v22 = vld [vmem:[%s1812_s3 + $0x20] sm:$0xff]  ;;  %1278 = vmatprep.subr.bf16.mxu1 %v1554_v16  ;;  %v133_v25 = vld [vmem:[%s1812_s3 + $0x58] sm:$0xff]  ;;  %1294 = vmatprep.subr.bf16.mxu0 %v1554_v16  ;;  %v132_v29 = vld [vmem:[%s1812_s3 + $0x50] sm:$0xff]  ;;  %v142_v45 = vsub.s32 0, %v141_v44  ;;  %v146_v47 = vsub.s32 1, %v141_v44 }
   0x6   :  { %v1584_v26 = vpack.c.bf16 %v128_v23, %v126_v22  ;;  %v1588_v27 = vpack.c.bf16 %v133_v25, %v131_v24  ;;  %v130_v28 = vld [vmem:[%s1812_s3 + $0x40] sm:$0xff]  ;;  %v135_v30 = vld [vmem:[%s1812_s3 + $0x68] sm:$0xff]  ;;  %v137_v31 = vld [vmem:[%s1812_s3 + $0x78] sm:$0xff]  ;;  %363 = vmatprep.mubr.f32.mxu0 %v1484_v38 }
   0x7   :  { %1280 = vmatpush1.bf16.msra.mxu1 %v1565_v20  ;;  %1296 = vmatpush1.bf16.msra.mxu0 %v1565_v20  ;;  %v1604_v33 = vpack.c.bf16 %v132_v29, %v130_v28  ;;  %v1609_v34 = vpack.c.bf16 %v137_v31, %v135_v30  ;;  %v134_v35 = vld [vmem:[%s1812_s3 + $0x60] sm:$0xff]  ;;  %v136_v36 = vld [vmem:[%s1812_s3 + $0x70] sm:$0xff] }
   0x8   :  { %1282 = vmatprep.subr.bf16.mxu1 %v1567_v21  ;;  %1298 = vmatprep.subr.bf16.mxu0 %v1567_v21  ;;  %v1619_v37 = vpack.c.bf16 %v136_v36, %v134_v35  ;;  %v138_v46 = vld [vmem:[%s1813_s4] sm:$0x3] }
   0x9   :  { %v1646_v48 = vrot.slane %v138_v46, %v142_v45  ;;  %v1648_v49 = vrot.slane %v138_v46, %v146_v47 }
   0xb   :  { %1284 = vmatpush1.bf16.msra.mxu1 %v1584_v26  ;;  %1300 = vmatpush1.bf16.msra.mxu0 %v1584_v26 }
   0xc   :  { %1286 = vmatprep.subr.bf16.mxu1 %v1588_v27  ;;  %1302 = vmatprep.subr.bf16.mxu0 %v1588_v27 }
   0xf   :  { %1288 = vmatpush1.bf16.msra.mxu1 %v1604_v33  ;;  %1304 = vmatpush1.bf16.msra.mxu0 %v1604_v33 }
  0x10   :  { %1290 = vmatprep.subr.bf16.mxu1 %v1609_v34  ;;  %1306 = vmatprep.subr.bf16.mxu0 %v1609_v34 }
  0x13   :  { %1292 = vmatpush1.bf16.msra.mxu1 %v1619_v37  ;;  %1308 = vmatpush1.bf16.msra.mxu0 %v1619_v37 }
  0x14   :  { %1310 = vmatprep.subr.bf16.mxu1 %v1554_v16  ;;  %1326 = vmatprep.subr.bf16.mxu0 %v1554_v16 }
  0xd7   :  { %v1265_v4 = vpop.f32.mrb[0].mxu0 }
  0xd8   :  { %v1539_v5 = vadd.f32 %v1265_v4, %v1239_v3  ;;  %v113_v6 = vpop.f32.mrb[1].mxu0 }
  0xd9   :  { %v1541_v7 = vadd.f32 %v1239_v3, %v113_v6 }
  0xdb   :  { %1417 = vtanh.f32 %v1541_v7  ;;  %v246_v52 = vrot.slane %v1541_v7, 2  ;;  %v370_v22 = vrot.slane %v1541_v7, 4 }
  0xe5   :  { %v1418_v8 = vpop.eup %1417 }
  0xe6   :  { %154 = vrot.lane.b32.xlu0 %v1418_v8, %s1481_s1  ;;  %v151_v9 = vmul.f32 0.5, %v1418_v8 }
  0xe8   :  { %v152_v10 = vadd.f32 0.5, %v151_v9 }
 0x158   :  { %v155_v11 = vpop.permute.xlu0 %154 }
 0x159   :  { %v157_v12 = vmul.f32 %v155_v11, %v152_v10 }
 0x15b   :  { %1419 = vtanh.f32 %v157_v12 }
 0x165   :  { %v1420_v32 = vpop.eup %1419 }
 0x166   :  { %160 = vrot.lane.b32.xlu0 %v1420_v32, %s1482_s10 }
 0x16a   :  { %253 = vrot.lane.b32.xlu0 %v157_v12, %s1483_s15 }
 0x1d8   :  { %v161_v39 = vpop.permute.xlu0 %160 }
 0x1d9   :  { %v163_v40 = vmul.f32 %v161_v39, %v152_v10 }
 0x1db   :  { %165 = vrot.lane.b32.xlu1 %v163_v40, %s1483_s15 }
 0x1dc   :  { %v254_v59 = vpop.permute.xlu0 %253 }
 0x24d   :  { %v166_v41 = vpop.permute.xlu1 %165 }
 0x24e   :  { %v169_v42 = vsel %vm168_vm2, %v166_v41, 0.0 }
 0x24f   :  { %1243 = vmatmul.mubr.msk.f32.vlgmr.msra.gmra.mrb[0].mxu1 %vm170_vm3, %v169_v42 }
 0x250   :  { %1312 = vmatpush1.bf16.msra.mxu1 %v1565_v20  ;;  %493 = vmatprep.mubr.f32.mxu1 %v1484_v38 }
 0x251   :  { %1314 = vmatprep.subr.bf16.mxu1 %v1567_v21 }
 0x254   :  { %1316 = vmatpush1.bf16.msra.mxu1 %v1584_v26 }
 0x255   :  { %1318 = vmatprep.subr.bf16.mxu1 %v1588_v27 }
 0x258   :  { %1320 = vmatpush1.bf16.msra.mxu1 %v1604_v33 }
 0x259   :  { %1322 = vmatprep.subr.bf16.mxu1 %v1609_v34 }
 0x25c   :  { %1324 = vmatpush1.bf16.msra.mxu1 %v1619_v37 }
 0x25d   :  { %1342 = vmatprep.subr.bf16.mxu1 %v1554_v16 }
 0x322   :  { %v240_v50 = vpop.f32.mrb[0].mxu1 }
 0x323   :  { %v241_v51 = vadd.f32 %v240_v50, %v1646_v48  ;;  %v242_v53 = vpop.f32.mrb[1].mxu1 }
 0x324   :  { %v243_v54 = vadd.f32 %v242_v53, %v1648_v49 }
 0x325   :  { %v248_v55 = vadd.f32 %v246_v52, %v241_v51 }
 0x326   :  { %1421 = vtanh.f32 %v243_v54 }
 0x327   :  { %1423 = vtanh.f32 %v248_v55 }
 0x330   :  { %v1422_v56 = vpop.eup %1421 }
 0x331   :  { %v1424_v57 = vpop.eup %1423  ;;  %277 = vrot.lane.b32.xlu0 %v1422_v56, %s1481_s1  ;;  %v274_v58 = vmul.f32 0.5, %v1422_v56 }
 0x332   :  { %258 = vrot.lane.b32.xlu1 %v1424_v57, %s1481_s1  ;;  %v250_v60 = vmul.f32 0.5, %v1424_v57 }
 0x333   :  { %v275_v61 = vadd.f32 0.5, %v274_v58 }
 0x334   :  { %v251_v63 = vadd.f32 0.5, %v250_v60 }
 0x336   :  { %v256_v4 = vmul.f32 %v254_v59, %v251_v63 }
 0x3a3   :  { %v278_v62 = vpop.permute.xlu0 %277 }
 0x3a4   :  { %v280_v0 = vmul.f32 %v278_v62, %v275_v61  ;;  %v259_v1 = vpop.permute.xlu1 %258  ;;  %v500_v62 = vrot.slane %v1541_v7, 6 }
 0x3a5   :  { %v261_v2 = vmul.f32 %v259_v1, %v251_v63 }
 0x3a6   :  { %1425 = vtanh.f32 %v280_v0 }
 0x3a7   :  { %263 = vrot.lane.b32.xlu1 %v261_v2, %s1483_s15 }
 0x3b0   :  { %v1426_v3 = vpop.eup %1425 }
 0x3b1   :  { %283 = vrot.lane.b32.xlu0 %v1426_v3, %s1482_s10 }
 0x419   :  { %v264_v6 = vpop.permute.xlu1 %263 }
 0x41a   :  { %v266_v8 = vadd.f32 %v264_v6, %v256_v4 }
 0x41c   :  { %1427 = vtanh.f32 %v266_v8 }
 0x423   :  { %v284_v9 = vpop.permute.xlu0 %283 }
 0x424   :  { %v286_v10 = vmul.f32 %v284_v9, %v275_v61 }
 0x426   :  { %v1428_v11 = vpop.eup %1427  ;;  %292 = vrot.lane.b32.xlu0 %v286_v10, %s1481_s1 }
 0x427   :  { %269 = vrot.lane.b32.xlu1 %v1428_v11, %s1481_s1 }
 0x498   :  { %v293_v14 = vpop.permute.xlu0 %292 }
 0x499   :  { %v270_v12 = vpop.permute.xlu1 %269 }
 0x49a   :  { %v272_v13 = vmul.f32 %v270_v12, %v251_v63 }
 0x49c   :  { %288 = vrot.lane.b32.xlu1 %v272_v13, %s1483_s15 }
 0x50e   :  { %v289_v15 = vpop.permute.xlu1 %288 }
 0x50f   :  { %v295_v17 = vsel %vm168_vm2, %v289_v15, %v293_v14 }
 0x510   :  { %1244 = vmatmul.mubr.msk.f32.vlgmr.msra.gmra.mrb[2].mxu0 %vm170_vm3, %v295_v17 }
 0x511   :  { %1328 = vmatpush1.bf16.msra.mxu0 %v1565_v20  ;;  %619 = vmatprep.mubr.f32.mxu0 %v1484_v38 }
 0x512   :  { %1330 = vmatprep.subr.bf16.mxu0 %v1567_v21 }
 0x515   :  { %1332 = vmatpush1.bf16.msra.mxu0 %v1584_v26 }
 0x516   :  { %1334 = vmatprep.subr.bf16.mxu0 %v1588_v27 }
 0x519   :  { %1336 = vmatpush1.bf16.msra.mxu0 %v1604_v33 }
 0x51a   :  { %1338 = vmatprep.subr.bf16.mxu0 %v1609_v34 }
 0x51d   :  { %1340 = vmatpush1.bf16.msra.mxu0 %v1619_v37 }
 0x51e   :  { %1358 = vmatprep.subr.bf16.mxu0 %v1554_v16 }
 0x5e3   :  { %v365_v18 = vpop.f32.mrb[2].mxu0 }
 0x5e4   :  { %v366_v19 = vadd.f32 %v365_v18, %v1646_v48  ;;  %v367_v23 = vpop.f32.mrb[3].mxu0 }
 0x5e5   :  { %v368_v24 = vadd.f32 %v367_v23, %v1648_v49 }
 0x5e6   :  { %v372_v25 = vadd.f32 %v370_v22, %v366_v19 }
 0x5e7   :  { %1429 = vtanh.f32 %v368_v24 }
 0x5e8   :  { %1431 = vtanh.f32 %v372_v25 }
 0x5f1   :  { %v1430_v28 = vpop.eup %1429 }
 0x5f2   :  { %v1432_v29 = vpop.eup %1431  ;;  %402 = vrot.lane.b32.xlu0 %v1430_v28, %s1481_s1  ;;  %v394_v30 = vmul.f32 0.5, %v1430_v28 }
 0x5f3   :  { %378 = vrot.lane.b32.xlu1 %v1432_v29, %s1481_s1  ;;  %v374_v31 = vmul.f32 0.5, %v1432_v29 }
 0x5f4   :  { %v395_v32 = vadd.f32 0.5, %v394_v30 }
 0x5f5   :  { %v375_v36 = vadd.f32 0.5, %v374_v31 }
 0x5f7   :  { %397 = vrot.lane.b32.xlu1 %v280_v0, %s1483_s15  ;;  %v376_v45 = vmul.f32 %v375_v36, %v266_v8 }
 0x664   :  { %v403_v35 = vpop.permute.xlu0 %402 }
 0x665   :  { %v405_v39 = vmul.f32 %v403_v35, %v395_v32  ;;  %v379_v40 = vpop.permute.xlu1 %378 }
 0x666   :  { %v381_v41 = vmul.f32 %v379_v40, %v375_v36 }
 0x667   :  { %407 = vrot.lane.b32.xlu1 %v405_v39, %s1483_s15 }
 0x668   :  { %383 = vrot.lane.b32.xlu0 %v381_v41, %s1483_s15 }
 0x669   :  { %v398_v42 = vpop.permute.xlu1 %397 }
 0x66a   :  { %v400_v43 = vmul.f32 %v398_v42, %v395_v32 }
 0x6d9   :  { %v408_v44 = vpop.permute.xlu1 %407 }
 0x6da   :  { %v410_v46 = vadd.f32 %v408_v44, %v400_v43  ;;  %v384_v47 = vpop.permute.xlu0 %383 }
 0x6db   :  { %v386_v50 = vadd.f32 %v384_v47, %v376_v45 }
 0x6dc   :  { %1433 = vtanh.f32 %v410_v46 }
 0x6dd   :  { %1435 = vtanh.f32 %v386_v50 }
 0x6e6   :  { %v1434_v51 = vpop.eup %1433 }
 0x6e7   :  { %v1436_v52 = vpop.eup %1435  ;;  %413 = vrot.lane.b32.xlu1 %v1434_v51, %s1481_s1 }
 0x6e8   :  { %389 = vrot.lane.b32.xlu0 %v1436_v52, %s1481_s1 }
 0x759   :  { %v414_v53 = vpop.permute.xlu1 %413 }
 0x75a   :  { %v416_v54 = vmul.f32 %v414_v53, %v395_v32  ;;  %v390_v55 = vpop.permute.xlu0 %389 }
 0x75b   :  { %v392_v56 = vmul.f32 %v390_v55, %v375_v36 }
 0x75c   :  { %422 = vrot.lane.b32.xlu1 %v416_v54, %s1481_s1 }
 0x75d   :  { %418 = vrot.lane.b32.xlu0 %v392_v56, %s1483_s15 }
 0x7ce   :  { %v423_v57 = vpop.permute.xlu1 %422 }
 0x7cf   :  { %v419_v58 = vpop.permute.xlu0 %418 }
 0x7d0   :  { %v425_v59 = vsel %vm168_vm2, %v419_v58, %v423_v57 }
 0x7d1   :  { %1245 = vmatmul.mubr.msk.f32.vlgmr.msra.gmra.mrb[2].mxu1 %vm170_vm3, %v425_v59 }
 0x7d2   :  { %1344 = vmatpush1.bf16.msra.mxu1 %v1565_v20  ;;  %743 = vmatprep.mubr.f32.mxu1 %v1484_v38 }
 0x7d3   :  { %1346 = vmatprep.subr.bf16.mxu1 %v1567_v21 }
 0x7d6   :  { %1348 = vmatpush1.bf16.msra.mxu1 %v1584_v26 }
 0x7d7   :  { %1350 = vmatprep.subr.bf16.mxu1 %v1588_v27 }
 0x7da   :  { %1352 = vmatpush1.bf16.msra.mxu1 %v1604_v33 }
 0x7db   :  { %1354 = vmatprep.subr.bf16.mxu1 %v1609_v34 }
 0x7de   :  { %1356 = vmatpush1.bf16.msra.mxu1 %v1619_v37 }
 0x7df   :  { %1374 = vmatprep.subr.bf16.mxu1 %v1554_v16 }
 0x8a4   :  { %v495_v60 = vpop.f32.mrb[2].mxu1 }
 0x8a5   :  { %v496_v61 = vadd.f32 %v495_v60, %v1646_v48  ;;  %v497_v63 = vpop.f32.mrb[3].mxu1 }
 0x8a6   :  { %v498_v0 = vadd.f32 %v497_v63, %v1648_v49 }
 0x8a7   :  { %v502_v1 = vadd.f32 %v500_v62, %v496_v61 }
 0x8a8   :  { %1437 = vtanh.f32 %v498_v0 }
 0x8a9   :  { %1439 = vtanh.f32 %v502_v1 }
 0x8b2   :  { %v1438_v2 = vpop.eup %1437 }
 0x8b3   :  { %v1440_v3 = vpop.eup %1439  ;;  %528 = vrot.lane.b32.xlu1 %v1438_v2, %s1481_s1  ;;  %v524_v4 = vmul.f32 0.5, %v1438_v2 }
 0x8b4   :  { %508 = vrot.lane.b32.xlu0 %v1440_v3, %s1481_s1  ;;  %v504_v6 = vmul.f32 0.5, %v1440_v3 }
 0x8b5   :  { %v525_v8 = vadd.f32 0.5, %v524_v4 }
 0x8b6   :  { %v505_v10 = vadd.f32 0.5, %v504_v6 }
 0x8b7   :  { %v526_v13 = vmul.f32 %v525_v8, %v410_v46 }
 0x8b8   :  { %v506_v15 = vmul.f32 %v505_v10, %v386_v50 }
 0x925   :  { %v529_v9 = vpop.permute.xlu1 %528 }
 0x926   :  { %v531_v11 = vmul.f32 %v529_v9, %v525_v8  ;;  %v509_v12 = vpop.permute.xlu0 %508 }
 0x927   :  { %v511_v7 = vmul.f32 %v509_v12, %v505_v10 }
 0x928   :  { %533 = vrot.lane.b32.xlu1 %v531_v11, %s1483_s15 }
 0x929   :  { %513 = vrot.lane.b32.xlu0 %v511_v7, %s1483_s15 }
 0x99a   :  { %v534_v14 = vpop.permute.xlu1 %533 }
 0x99b   :  { %v536_v17 = vadd.f32 %v534_v14, %v526_v13  ;;  %v514_v18 = vpop.permute.xlu0 %513 }
 0x99c   :  { %v516_v19 = vadd.f32 %v514_v18, %v506_v15 }
 0x99d   :  { %1441 = vtanh.f32 %v536_v17 }
 0x99e   :  { %1443 = vtanh.f32 %v516_v19 }
 0x9a7   :  { %v1442_v22 = vpop.eup %1441 }
 0x9a8   :  { %v1444_v23 = vpop.eup %1443  ;;  %539 = vrot.lane.b32.xlu1 %v1442_v22, %s1481_s1 }
 0x9a9   :  { %519 = vrot.lane.b32.xlu0 %v1444_v23, %s1481_s1 }
 0xa1a   :  { %v540_v24 = vpop.permute.xlu1 %539 }
 0xa1b   :  { %v542_v25 = vmul.f32 %v540_v24, %v525_v8  ;;  %v520_v28 = vpop.permute.xlu0 %519  ;;  %v751_v8 = vrot.slane %v1539_v5, 2 }
 0xa1c   :  { %v522_v29 = vmul.f32 %v520_v28, %v505_v10 }
 0xa1d   :  { %548 = vrot.lane.b32.xlu1 %v542_v25, %s1481_s1 }
 0xa1e   :  { %544 = vrot.lane.b32.xlu0 %v522_v29, %s1483_s15 }
 0xa8f   :  { %v549_v30 = vpop.permute.xlu1 %548 }
 0xa90   :  { %v545_v31 = vpop.permute.xlu0 %544 }
 0xa91   :  { %v551_v32 = vsel %vm168_vm2, %v545_v31, %v549_v30 }
 0xa92   :  { %1246 = vmatmul.mubr.msk.f32.vlgmr.msra.gmra.mrb[4].mxu0 %vm170_vm3, %v551_v32 }
 0xa93   :  { %1360 = vmatpush1.bf16.msra.mxu0 %v1565_v20  ;;  %870 = vmatprep.mubr.f32.mxu0 %v1484_v38 }
 0xa94   :  { %1362 = vmatprep.subr.bf16.mxu0 %v1567_v21 }
 0xa97   :  { %1364 = vmatpush1.bf16.msra.mxu0 %v1584_v26 }
 0xa98   :  { %1366 = vmatprep.subr.bf16.mxu0 %v1588_v27 }
 0xa9b   :  { %1368 = vmatpush1.bf16.msra.mxu0 %v1604_v33 }
 0xa9c   :  { %1370 = vmatprep.subr.bf16.mxu0 %v1609_v34 }
 0xa9f   :  { %1372 = vmatpush1.bf16.msra.mxu0 %v1619_v37 }
 0xaa0   :  { %1390 = vmatprep.subr.bf16.mxu0 %v1554_v16 }
 0xb65   :  { %v621_v35 = vpop.f32.mrb[4].mxu0 }
 0xb66   :  { %v622_v36 = vadd.f32 %v621_v35, %v1646_v48  ;;  %v623_v39 = vpop.f32.mrb[5].mxu0 }
 0xb67   :  { %v624_v40 = vadd.f32 %v623_v39, %v1648_v49 }
 0xb68   :  { %v626_v41 = vadd.f32 %v622_v36, %v1539_v5 }
 0xb69   :  { %1445 = vtanh.f32 %v624_v40 }
 0xb6a   :  { %1447 = vtanh.f32 %v626_v41 }
 0xb73   :  { %v1446_v42 = vpop.eup %1445 }
 0xb74   :  { %v1448_v43 = vpop.eup %1447  ;;  %652 = vrot.lane.b32.xlu1 %v1446_v42, %s1481_s1  ;;  %v648_v44 = vmul.f32 0.5, %v1446_v42 }
 0xb75   :  { %632 = vrot.lane.b32.xlu0 %v1448_v43, %s1481_s1  ;;  %v628_v45 = vmul.f32 0.5, %v1448_v43 }
 0xb76   :  { %v649_v46 = vadd.f32 0.5, %v648_v44 }
 0xb77   :  { %v629_v47 = vadd.f32 0.5, %v628_v45 }
 0xb78   :  { %v650_v53 = vmul.f32 %v649_v46, %v536_v17 }
 0xb79   :  { %v630_v55 = vmul.f32 %v629_v47, %v516_v19 }
 0xbe6   :  { %v653_v16 = vpop.permute.xlu1 %652 }
 0xbe7   :  { %v655_v50 = vmul.f32 %v653_v16, %v649_v46  ;;  %v633_v51 = vpop.permute.xlu0 %632  ;;  %v877_v16 = vrot.slane %v1539_v5, 4 }
 0xbe8   :  { %v635_v52 = vmul.f32 %v633_v51, %v629_v47 }
 0xbe9   :  { %657 = vrot.lane.b32.xlu1 %v655_v50, %s1483_s15 }
 0xbea   :  { %637 = vrot.lane.b32.xlu0 %v635_v52, %s1483_s15 }
 0xc5b   :  { %v658_v54 = vpop.permute.xlu1 %657 }
 0xc5c   :  { %v660_v56 = vadd.f32 %v658_v54, %v650_v53  ;;  %v638_v57 = vpop.permute.xlu0 %637 }
 0xc5d   :  { %v640_v58 = vadd.f32 %v638_v57, %v630_v55 }
 0xc5e   :  { %1449 = vtanh.f32 %v660_v56 }
 0xc5f   :  { %1451 = vtanh.f32 %v640_v58 }
 0xc68   :  { %v1450_v59 = vpop.eup %1449 }
 0xc69   :  { %v1452_v60 = vpop.eup %1451  ;;  %663 = vrot.lane.b32.xlu1 %v1450_v59, %s1481_s1 }
 0xc6a   :  { %643 = vrot.lane.b32.xlu0 %v1452_v60, %s1481_s1 }
 0xcdb   :  { %v664_v61 = vpop.permute.xlu1 %663 }
 0xcdc   :  { %v666_v62 = vmul.f32 %v664_v61, %v649_v46  ;;  %v644_v63 = vpop.permute.xlu0 %643 }
 0xcdd   :  { %v646_v0 = vmul.f32 %v644_v63, %v629_v47 }
 0xcde   :  { %672 = vrot.lane.b32.xlu1 %v666_v62, %s1481_s1 }
 0xcdf   :  { %668 = vrot.lane.b32.xlu0 %v646_v0, %s1483_s15 }
 0xd50   :  { %v673_v1 = vpop.permute.xlu1 %672 }
 0xd51   :  { %v669_v2 = vpop.permute.xlu0 %668 }
 0xd52   :  { %v675_v3 = vsel %vm168_vm2, %v669_v2, %v673_v1 }
 0xd53   :  { %1247 = vmatmul.mubr.msk.f32.vlgmr.msra.gmra.mrb[4].mxu1 %vm170_vm3, %v675_v3 }
 0xd54   :  { %1376 = vmatpush1.bf16.msra.mxu1 %v1565_v20  ;;  %996 = vmatprep.mubr.f32.mxu1 %v1484_v38 }
 0xd55   :  { %1378 = vmatprep.subr.bf16.mxu1 %v1567_v21 }
 0xd58   :  { %1380 = vmatpush1.bf16.msra.mxu1 %v1584_v26 }
 0xd59   :  { %1382 = vmatprep.subr.bf16.mxu1 %v1588_v27 }
 0xd5c   :  { %1384 = vmatpush1.bf16.msra.mxu1 %v1604_v33 }
 0xd5d   :  { %1386 = vmatprep.subr.bf16.mxu1 %v1609_v34 }
 0xd60   :  { %1388 = vmatpush1.bf16.msra.mxu1 %v1619_v37 }
 0xe26   :  { %v745_v4 = vpop.f32.mrb[4].mxu1 }
 0xe27   :  { %v746_v6 = vadd.f32 %v745_v4, %v1646_v48  ;;  %v747_v9 = vpop.f32.mrb[5].mxu1 }
 0xe28   :  { %v748_v10 = vadd.f32 %v747_v9, %v1648_v49 }
 0xe29   :  { %v753_v11 = vadd.f32 %v751_v8, %v746_v6 }
 0xe2a   :  { %1453 = vtanh.f32 %v748_v10  ;;  %v1003_v10 = vrot.slane %v1539_v5, 6 }
 0xe2b   :  { %1455 = vtanh.f32 %v753_v11 }
 0xe34   :  { %v1454_v12 = vpop.eup %1453 }
 0xe35   :  { %v1456_v7 = vpop.eup %1455  ;;  %779 = vrot.lane.b32.xlu1 %v1454_v12, %s1481_s1  ;;  %v775_v13 = vmul.f32 0.5, %v1454_v12 }
 0xe36   :  { %759 = vrot.lane.b32.xlu0 %v1456_v7, %s1481_s1  ;;  %v755_v14 = vmul.f32 0.5, %v1456_v7 }
 0xe37   :  { %v776_v15 = vadd.f32 0.5, %v775_v13 }
 0xe38   :  { %v756_v18 = vadd.f32 0.5, %v755_v14 }
 0xe39   :  { %v777_v24 = vmul.f32 %v776_v15, %v660_v56 }
 0xe3a   :  { %v757_v28 = vmul.f32 %v756_v18, %v640_v58 }
 0xea7   :  { %v780_v17 = vpop.permute.xlu1 %779 }
 0xea8   :  { %v782_v19 = vmul.f32 %v780_v17, %v776_v15  ;;  %v760_v22 = vpop.permute.xlu0 %759 }
 0xea9   :  { %v762_v23 = vmul.f32 %v760_v22, %v756_v18 }
 0xeaa   :  { %784 = vrot.lane.b32.xlu1 %v782_v19, %s1483_s15 }
 0xeab   :  { %764 = vrot.lane.b32.xlu0 %v762_v23, %s1483_s15 }
 0xf1c   :  { %v785_v25 = vpop.permute.xlu1 %784 }
 0xf1d   :  { %v787_v29 = vadd.f32 %v785_v25, %v777_v24  ;;  %v765_v30 = vpop.permute.xlu0 %764 }
 0xf1e   :  { %v767_v31 = vadd.f32 %v765_v30, %v757_v28 }
 0xf1f   :  { %1457 = vtanh.f32 %v787_v29 }
 0xf20   :  { %1459 = vtanh.f32 %v767_v31 }
 0xf29   :  { %v1458_v32 = vpop.eup %1457 }
 0xf2a   :  { %v1460_v35 = vpop.eup %1459  ;;  %790 = vrot.lane.b32.xlu1 %v1458_v32, %s1481_s1 }
 0xf2b   :  { %770 = vrot.lane.b32.xlu0 %v1460_v35, %s1481_s1 }
 0xf9c   :  { %v791_v36 = vpop.permute.xlu1 %790 }
 0xf9d   :  { %v793_v39 = vmul.f32 %v791_v36, %v776_v15  ;;  %v771_v40 = vpop.permute.xlu0 %770 }
 0xf9e   :  { %v773_v41 = vmul.f32 %v771_v40, %v756_v18 }
 0xf9f   :  { %799 = vrot.lane.b32.xlu1 %v793_v39, %s1481_s1 }
 0xfa0   :  { %795 = vrot.lane.b32.xlu0 %v773_v41, %s1483_s15 }
0x1011   :  { %v800_v42 = vpop.permute.xlu1 %799 }
0x1012   :  { %v796_v43 = vpop.permute.xlu0 %795 }
0x1013   :  { %v802_v44 = vsel %vm168_vm2, %v796_v43, %v800_v42 }
0x1014   :  { %1248 = vmatmul.mubr.msk.f32.vlgmr.msra.gmra.mrb[6].mxu0 %vm170_vm3, %v802_v44 }
0x1015   :  { %1392 = vmatpush1.bf16.msra.mxu0 %v1565_v20  ;;  %1122 = vmatprep.mubr.f32.mxu0 %v1484_v38 }
0x1016   :  { %1394 = vmatprep.subr.bf16.mxu0 %v1567_v21 }
0x1019   :  { %1396 = vmatpush1.bf16.msra.mxu0 %v1584_v26 }
0x101a   :  { %1398 = vmatprep.subr.bf16.mxu0 %v1588_v27 }
0x101d   :  { %1400 = vmatpush1.bf16.msra.mxu0 %v1604_v33 }
0x101e   :  { %1402 = vmatprep.subr.bf16.mxu0 %v1609_v34 }
0x1021   :  { %1404 = vmatpush1.bf16.msra.mxu0 %v1619_v37 }
0x10e7   :  { %v872_v45 = vpop.f32.mrb[6].mxu0 }
0x10e8   :  { %v873_v46 = vadd.f32 %v872_v45, %v1646_v48  ;;  %v874_v20 = vpop.f32.mrb[7].mxu0 }
0x10e9   :  { %v875_v47 = vadd.f32 %v874_v20, %v1648_v49 }
0x10ea   :  { %v879_v50 = vadd.f32 %v877_v16, %v873_v46 }
0x10eb   :  { %1461 = vtanh.f32 %v875_v47 }
0x10ec   :  { %1463 = vtanh.f32 %v879_v50 }
0x10f5   :  { %v1462_v21 = vpop.eup %1461 }
0x10f6   :  { %v1464_v26 = vpop.eup %1463  ;;  %905 = vrot.lane.b32.xlu1 %v1462_v21, %s1481_s1  ;;  %v901_v27 = vmul.f32 0.5, %v1462_v21 }
0x10f7   :  { %885 = vrot.lane.b32.xlu0 %v1464_v26, %s1481_s1  ;;  %v881_v33 = vmul.f32 0.5, %v1464_v26 }
0x10f8   :  { %v902_v34 = vadd.f32 0.5, %v901_v27 }
0x10f9   :  { %v882_v51 = vadd.f32 0.5, %v881_v33 }
0x10fa   :  { %v903_v55 = vmul.f32 %v902_v34, %v787_v29 }
0x10fb   :  { %v883_v57 = vmul.f32 %v882_v51, %v767_v31 }
0x1168   :  { %v906_v37 = vpop.permute.xlu1 %905 }
0x1169   :  { %v908_v52 = vmul.f32 %v906_v37, %v902_v34  ;;  %v886_v53 = vpop.permute.xlu0 %885  ;;  %v1485_v37 = vmov 0.0|0.0  }
0x116a   :  { %v888_v54 = vmul.f32 %v886_v53, %v882_v51  ;;  %1405 = vmatprep.subr.bf16.mxu1 %v1485_v37 }
0x116b   :  { %910 = vrot.lane.b32.xlu1 %v908_v52, %s1483_s15  ;;  %v1150_v52 = vld [vmem:[%s1814_s5 + $0x10] sm:$0xff] }
0x116c   :  { %890 = vrot.lane.b32.xlu0 %v888_v54, %s1483_s15  ;;  %v1151_v54 = vld [vmem:[%s1814_s5 + $0x18] sm:$0xff] }
0x11dd   :  { %v911_v56 = vpop.permute.xlu1 %910 }
0x11de   :  { %v913_v58 = vadd.f32 %v911_v56, %v903_v55  ;;  %v891_v59 = vpop.permute.xlu0 %890  ;;  %v1409_v55 = vpack.c.bf16 %v1151_v54, %v1150_v52 }
0x11df   :  { %v893_v60 = vadd.f32 %v891_v59, %v883_v57 }
0x11e0   :  { %1465 = vtanh.f32 %v913_v58 }
0x11e1   :  { %1467 = vtanh.f32 %v893_v60 }
0x11ea   :  { %v1466_v61 = vpop.eup %1465 }
0x11eb   :  { %v1468_v62 = vpop.eup %1467  ;;  %916 = vrot.lane.b32.xlu1 %v1466_v61, %s1481_s1 }
0x11ec   :  { %896 = vrot.lane.b32.xlu0 %v1468_v62, %s1481_s1 }
0x125d   :  { %v917_v63 = vpop.permute.xlu1 %916 }
0x125e   :  { %v919_v0 = vmul.f32 %v917_v63, %v902_v34  ;;  %v897_v1 = vpop.permute.xlu0 %896 }
0x125f   :  { %v899_v2 = vmul.f32 %v897_v1, %v882_v51  ;;  %v1149_v51 = vld [vmem:[%s1814_s5 + $0x8] sm:$0xff] }
0x1260   :  { %925 = vrot.lane.b32.xlu1 %v919_v0, %s1481_s1 }
0x1261   :  { %921 = vrot.lane.b32.xlu0 %v899_v2, %s1483_s15 }
0x12d2   :  { %v926_v3 = vpop.permute.xlu1 %925 }
0x12d3   :  { %v922_v4 = vpop.permute.xlu0 %921 }
0x12d4   :  { %v928_v6 = vsel %vm168_vm2, %v922_v4, %v926_v3 }
0x12d5   :  { %1249 = vmatmul.mubr.msk.f32.vlgmr.msra.gmra.mrb[6].mxu1 %vm170_vm3, %v928_v6 }
0x12d6   :  { %1274 = vmatprep.mubr.msk.f32.mxu1 %vm1486_vm4, %v1484_v38  ;;  %v1251_v38 = vld [vmem:[%s1815_s6] ss:$0 sm:$0xff] }
0x13a8   :  { %v998_v8 = vpop.f32.mrb[6].mxu1 }
0x13a9   :  { %v999_v9 = vadd.f32 %v998_v8, %v1646_v48  ;;  %v1000_v11 = vpop.f32.mrb[7].mxu1 }
0x13aa   :  { %v1001_v12 = vadd.f32 %v1000_v11, %v1648_v49 }
0x13ab   :  { %v1005_v7 = vadd.f32 %v1003_v10, %v999_v9 }
0x13ac   :  { %1469 = vtanh.f32 %v1001_v12 }
0x13ad   :  { %1471 = vtanh.f32 %v1005_v7 }
0x13b6   :  { %v1470_v13 = vpop.eup %1469 }
0x13b7   :  { %v1472_v14 = vpop.eup %1471  ;;  %1031 = vrot.lane.b32.xlu1 %v1470_v13, %s1481_s1  ;;  %v1027_v15 = vmul.f32 0.5, %v1470_v13 }
0x13b8   :  { %1011 = vrot.lane.b32.xlu0 %v1472_v14, %s1481_s1  ;;  %v1007_v17 = vmul.f32 0.5, %v1472_v14 }
0x13b9   :  { %v1028_v18 = vadd.f32 0.5, %v1027_v15 }
0x13ba   :  { %v1008_v22 = vadd.f32 0.5, %v1007_v17 }
0x13bb   :  { %v1029_v24 = vmul.f32 %v1028_v18, %v913_v58 }
0x13bc   :  { %v1009_v28 = vmul.f32 %v1008_v22, %v893_v60 }
0x1429   :  { %v1032_v19 = vpop.permute.xlu1 %1031 }
0x142a   :  { %v1034_v48 = vmul.f32 %v1032_v19, %v1028_v18  ;;  %v1012_v23 = vpop.permute.xlu0 %1011 }
0x142b   :  { %v1014_v5 = vmul.f32 %v1012_v23, %v1008_v22 }
0x142c   :  { %1036 = vrot.lane.b32.xlu1 %v1034_v48, %s1483_s15 }
0x142d   :  { %1016 = vrot.lane.b32.xlu0 %v1014_v5, %s1483_s15 }
0x149e   :  { %v1037_v25 = vpop.permute.xlu1 %1036 }
0x149f   :  { %v1039_v29 = vadd.f32 %v1037_v25, %v1029_v24  ;;  %v1017_v30 = vpop.permute.xlu0 %1016 }
0x14a0   :  { %v1019_v31 = vadd.f32 %v1017_v30, %v1009_v28 }
0x14a1   :  { %1473 = vtanh.f32 %v1039_v29 }
0x14a2   :  { %1475 = vtanh.f32 %v1019_v31 }
0x14ab   :  { %v1474_v32 = vpop.eup %1473 }
0x14ac   :  { %v1476_v35 = vpop.eup %1475  ;;  %1042 = vrot.lane.b32.xlu1 %v1474_v32, %s1481_s1 }
0x14ad   :  { %1022 = vrot.lane.b32.xlu0 %v1476_v35, %s1481_s1 }
0x151e   :  { %v1043_v36 = vpop.permute.xlu1 %1042 }
0x151f   :  { %v1045_v39 = vmul.f32 %v1043_v36, %v1028_v18  ;;  %v1023_v40 = vpop.permute.xlu0 %1022 }
0x1520   :  { %v1025_v41 = vmul.f32 %v1023_v40, %v1008_v22 }
0x1521   :  { %1051 = vrot.lane.b32.xlu1 %v1045_v39, %s1481_s1 }
0x1522   :  { %1047 = vrot.lane.b32.xlu0 %v1025_v41, %s1483_s15 }
0x1593   :  { %v1052_v42 = vpop.permute.xlu1 %1051 }
0x1594   :  { %v1048_v43 = vpop.permute.xlu0 %1047 }
0x1595   :  { %v1054_v44 = vsel %vm168_vm2, %v1048_v43, %v1052_v42 }
0x1596   :  { %1250 = vmatmul.mubr.msk.f32.vlgmr.msra.gmra.mrb[8].mxu0 %vm170_vm3, %v1054_v44 }
0x1669   :  { %v1124_v45 = vpop.f32.mrb[8].mxu0 }
0x166a   :  { %v1125_v46 = vpop.f32.mrb[9].mxu0 }
0x166b   :  { %v1126_v16 = vadd.f32 %v1125_v46, %v1648_v49  ;;  %v1148_v49 = vld [vmem:[%s1814_s5] sm:$0xff] }
0x166c   :  { %v1406_v53 = vpack.c.bf16 %v1149_v51, %v1148_v49 }
0x166d   :  { %1477 = vtanh.f32 %v1126_v16 }
0x166e   :  { %1407 = vmatpush3.bf16.msra.mxu1 %v1406_v53 }
0x166f   :  { %1408 = vmatprep.subr.bf16.mxu1 %v1485_v37 }
0x1672   :  { %1410 = vmatpush3.bf16.msra.mxu1 %v1409_v55 }
0x1677   :  { %v1478_v20 = vpop.eup %1477 }
0x1678   :  { %1133 = vrot.lane.b32.xlu0 %v1478_v20, %s1481_s1  ;;  %v1129_v47 = vmul.f32 0.5, %v1478_v20 }
0x167a   :  { %v1130_v50 = vadd.f32 0.5, %v1129_v47 }
0x167c   :  { %v1131_v27 = vmul.f32 %v1130_v50, %v1039_v29 }
0x16ea   :  { %v1134_v21 = vpop.permute.xlu0 %1133 }
0x16eb   :  { %v1136_v26 = vmul.f32 %v1134_v21, %v1130_v50 }
0x16ed   :  { %1138 = vrot.lane.b32.xlu1 %v1136_v26, %s1483_s15 }
0x175f   :  { %v1139_v33 = vpop.permute.xlu1 %1138 }
0x1760   :  { %v1141_v34 = vadd.f32 %v1139_v33, %v1131_v27 }
0x1762   :  { %1479 = vtanh.f32 %v1141_v34 }
0x176c   :  { %v1480_v56 = vpop.eup %1479 }
0x176d   :  { %1144 = vrot.lane.b32.xlu0 %v1480_v56, %s1481_s1 }
0x17df   :  { %v1145_v57 = vpop.permute.xlu0 %1144 }
0x17e0   :  { %v1147_v58 = vmul.f32 %v1145_v57, %v1130_v50 }
0x17e2   :  { %1160 = vrot.lane.b32.xlu1 %v1147_v58, %s1483_s15 }
0x1854   :  { %v1161_v59 = vpop.permute.xlu1 %1160 }
0x1855   :  { %1275 = vmatmul.mubr.msk.f32.vlgmr.msra.gmra.mrb[8].mxu1 %vm168_vm2, %v1161_v59 }
0x1928   :  { %v1230_v60 = vpop.f32.mrb[8].mxu1 }
0x1929   :  { %v1231_v61 = vadd.f32 %v1251_v38, %v1230_v60  ;;  %v1276_v62 = vpop.f32.mrb[9].mxu1 }
0x192b   :  { %1234 = vst [vmem:[%s1816_s7] sm:$0x3] %v1231_v61 }

</bundles_post_ra>
